<compile_context>
chip_gen: v5e
topology: v5e:2x2
jax: 0.10.0
libtpu: 0.0.40
codegen_flags: <defaults>
</compile_context>

<pallas_src>
import functools

import jax
import jax.numpy as jnp
from jax.experimental import pallas as pl
from jax.experimental.pallas import tpu as pltpu

NUM_JOINTS = 17
LAST_INP_CHANNELS = 279       # UHRNet_W18_Small
BN_EPS = 1e-5


def _cdiv(a, b):
    return (a + b - 1) // b


def _pick_tn(hw, desired_tn, batch):
    """Pick a lane-dense spatial tile (multiple of 128).

    Balances the spatial grid steps (no tiny trailing tile) and keeps >= 2 total
    grid steps whenever possible so both v7x TensorCores get work.
    """
    lane_tiles = _cdiv(hw, 128)                   # 128-wide lane groups needed
    cap = max(1, desired_tn // 128)               # VMEM-friendly upper bound on tiles/step
    if batch == 1 and lane_tiles >= 2:
        cap = max(1, min(cap, lane_tiles // 2))   # force >= 2 spatial steps for megacore
    n_steps = _cdiv(lane_tiles, cap)
    per_step = _cdiv(lane_tiles, n_steps)         # balanced split
    return per_step * 128, n_steps


# ----------------------------------------------------------------------------
# Pallas kernel:  o = W2 @ relu(W1' @ x + b1') + b2     (all 1x1 convs, NCHW)
#   W1' / b1' have the eval-mode BatchNorm folded in.
#   x tile: (C, TN) f32  -> cast to bf16 in VMEM for the MXU, f32 accumulation.
# ----------------------------------------------------------------------------
def head_kernel(x_ref, w1_ref, b1_ref, w2_ref, b2_ref, o_ref):
    x = x_ref[...].astype(jnp.bfloat16)                                # (C, TN)
    h = jnp.dot(w1_ref[...], x, preferred_element_type=jnp.float32)    # (C, TN) f32
    h = jnp.maximum(h + b1_ref[...], 0.0)                              # BN+bias fold, ReLU
    o = jnp.dot(w2_ref[...], h.astype(jnp.bfloat16),
                preferred_element_type=jnp.float32)                    # (J, TN) f32
    o_ref[...] = o + b2_ref[...]                                       # last conv bias


@functools.partial(jax.jit, static_argnames=("tn",))
def uhrnet_head_pallas(x_nchw, w1, b1, gamma, beta, run_mean, run_var,
                       w2, b2, tn=4096):
    """x_nchw: [B, 279, H, W] backbone features. Returns [B, 17, H, W] (f32)."""
    B, C, H, W = x_nchw.shape
    assert C == LAST_INP_CHANNELS
    J = NUM_JOINTS
    HW = H * W

    # Fold eval-mode BatchNorm + conv_1 bias into the first weight/bias.
    bn_scale = gamma / jnp.sqrt(run_var + BN_EPS)                             # [C]
    bn_shift = beta - run_mean * bn_scale                                     # [C]
    w1f = (w1.astype(jnp.float32) * bn_scale[:, None]).astype(jnp.bfloat16)   # (C, C)
    b1f = (b1 * bn_scale + bn_shift).astype(jnp.float32)[:, None]             # (C, 1)
    w2f = w2.astype(jnp.bfloat16)                                             # (J, C)
    b2f = b2.astype(jnp.float32)[:, None]                                     # (J, 1)

    # NCHW -> [B, C, HW] is a free reshape (no transpose, no HBM copy).
    x = x_nchw.astype(jnp.float32).reshape(B, C, HW)

    tn_eff, n_spatial = _pick_tn(HW, tn, B)
    grid = (B, n_spatial)
    const = lambda b, s: (0, 0)

    cost = pl.CostEstimate(
        flops=2 * B * HW * (C * C + C * J),
        transcendentals=0,
        bytes_accessed=x.size * 4 + B * J * HW * 4 + (C * C + C * J) * 2 + (C + J) * 4,
    )

    out = pl.pallas_call(
        head_kernel,
        out_shape=jax.ShapeDtypeStruct((B, J, HW), jnp.float32),
        grid_spec=pltpu.PrefetchScalarGridSpec(
            num_scalar_prefetch=0,
            grid=grid,
            in_specs=[
                pl.BlockSpec((None, C, tn_eff), lambda b, s: (b, 0, s)),  # x tile
                pl.BlockSpec((C, C), const),                              # W1 (BN folded)
                pl.BlockSpec((C, 1), const),                              # b1 (BN folded)
                pl.BlockSpec((J, C), const),                              # W2
                pl.BlockSpec((J, 1), const),                              # b2
            ],
            out_specs=pl.BlockSpec((None, J, tn_eff), lambda b, s: (b, 0, s)),
        ),
        compiler_params=pltpu.CompilerParams(
            dimension_semantics=("parallel", "parallel"),
            vmem_limit_bytes=32 * 1024 * 1024,
        ),
        cost_estimate=cost,
    )(x, w1f, b1f, w2f, b2f)

    return out.reshape(B, J, H, W)                                      # NCHW, free reshape


# ----------------------------------------------------------------------------
# Plain-JAX reference of the head (for correctness check)
# ----------------------------------------------------------------------------
def uhrnet_head_ref(x_nchw, w1, b1, gamma, beta, run_mean, run_var, w2, b2):
    B, C, H, W = x_nchw.shape
    x = jnp.transpose(x_nchw, (0, 2, 3, 1)).reshape(-1, C)
    h = x @ w1.T + b1
    h = (h - run_mean) / jnp.sqrt(run_var + BN_EPS) * gamma + beta
    h = jnp.maximum(h, 0.0)
    o = h @ w2.T + b2
    o = o.reshape(B, H, W, NUM_JOINTS)
    return jnp.transpose(o, (0, 3, 1, 2))


if __name__ == "__main__":
    key = jax.random.PRNGKey(0)
    ks = jax.random.split(key, 8)

    B, C, H, W = 2, LAST_INP_CHANNELS, 16, 16    # backbone output at small res
    x = jax.random.normal(ks[0], (B, C, H, W), jnp.float32)

    # Deterministic parameter init (mirrors init_weights: conv std=0.001, bias=0;
    # BN uses non-trivial running stats so the check is meaningful).
    w1 = 0.001 * jax.random.normal(ks[1], (C, C), jnp.float32)   # conv_1 weight (1x1)
    b1 = jnp.zeros((C,), jnp.float32)                            # conv_1 bias
    gamma = jnp.ones((C,), jnp.float32)                          # BN weight
    beta = jnp.zeros((C,), jnp.float32)                          # BN bias
    run_mean = 0.01 * jax.random.normal(ks[2], (C,), jnp.float32)
    run_var = jnp.abs(jax.random.normal(ks[3], (C,), jnp.float32)) + 0.5
    w2 = 0.001 * jax.random.normal(ks[4], (NUM_JOINTS, C), jnp.float32)  # last conv
    b2 = jnp.zeros((NUM_JOINTS,), jnp.float32)

    out = uhrnet_head_pallas(x, w1, b1, gamma, beta, run_mean, run_var, w2, b2)
    out = jax.block_until_ready(out)

    ref = uhrnet_head_ref(x, w1, b1, gamma, beta, run_mean, run_var, w2, b2)
    assert out.shape == (B, NUM_JOINTS, H, W), out.shape
    # bf16 weights/activations with f32 accumulation -> relaxed tolerance vs f32 ref.
    assert jnp.allclose(out, ref, atol=1e-3, rtol=2e-2), \
        float(jnp.max(jnp.abs(out - ref)))

    print("KERNEL_OK")
</pallas_src>

<mosaic_0001>
module attributes {stable_mosaic.version = 11 : i64} {
  func.func @head_kernel(%arg0: i32, %arg1: i32, %arg2: memref<1x279x256xf32, #tpu.memory_space<vmem>>, %arg3: memref<279x279xbf16, #tpu.memory_space<vmem>>, %arg4: memref<279x1xf32, #tpu.memory_space<vmem>>, %arg5: memref<17x279xbf16, #tpu.memory_space<vmem>>, %arg6: memref<17x1xf32, #tpu.memory_space<vmem>>, %arg7: memref<1x17x256xf32, #tpu.memory_space<vmem>>) attributes {dimension_semantics = [#tpu.dimension_semantics<parallel>, #tpu.dimension_semantics<parallel>], iteration_bounds = array<i64: 2, 1>, scalar_prefetch = 0 : i64, scratch_operands = 0 : i64, tpu.core_type = #tpu.core_type<tc>, window_params = [{transform_indices = @transform_0, window_bounds = array<i64: 1, 279, 256>}, {pipeline_mode = #tpu.pipeline_mode<synchronous>, transform_indices = @transform_1, window_bounds = array<i64: 279, 279>}, {pipeline_mode = #tpu.pipeline_mode<synchronous>, transform_indices = @transform_2, window_bounds = array<i64: 279, 1>}, {pipeline_mode = #tpu.pipeline_mode<synchronous>, transform_indices = @transform_3, window_bounds = array<i64: 17, 279>}, {pipeline_mode = #tpu.pipeline_mode<synchronous>, transform_indices = @transform_4, window_bounds = array<i64: 17, 1>}, {transform_indices = @transform_5, window_bounds = array<i64: 1, 17, 256>}]} {
    %c0 = arith.constant 0 : index
    %c0_0 = arith.constant 0 : index
    %c0_1 = arith.constant 0 : index
    %0 = vector.load %arg2[%c0, %c0_0, %c0_1] : memref<1x279x256xf32, #tpu.memory_space<vmem>>, vector<1x279x256xf32>
    %1 = vector.shape_cast %0 : vector<1x279x256xf32> to vector<279x256xf32>
    %2 = arith.truncf %1 : vector<279x256xf32> to vector<279x256xbf16>
    %c0_2 = arith.constant 0 : index
    %c0_3 = arith.constant 0 : index
    %3 = vector.load %arg3[%c0_2, %c0_3] : memref<279x279xbf16, #tpu.memory_space<vmem>>, vector<279x279xbf16>
    %cst = arith.constant dense<0.000000e+00> : vector<279x256xf32>
    %4 = tpu.matmul %3, %2, %cst {dimension_numbers = #tpu.dot_dimension_numbers<[1], [0], [0], [1], [0, 0, 1, 1], [], []>} : vector<279x279xbf16>, vector<279x256xbf16>, vector<279x256xf32> -> vector<279x256xf32>
    %c0_4 = arith.constant 0 : index
    %c0_5 = arith.constant 0 : index
    %5 = vector.load %arg4[%c0_4, %c0_5] : memref<279x1xf32, #tpu.memory_space<vmem>>, vector<279x1xf32>
    %6 = vector.broadcast %5 : vector<279x1xf32> to vector<279x256xf32>
    %7 = arith.addf %4, %6 : vector<279x256xf32>
    %cst_6 = arith.constant 0.000000e+00 : f32
    %8 = vector.broadcast %cst_6 : f32 to vector<279x256xf32>
    %9 = arith.maximumf %7, %8 : vector<279x256xf32>
    %c0_7 = arith.constant 0 : index
    %c0_8 = arith.constant 0 : index
    %10 = vector.load %arg5[%c0_7, %c0_8] : memref<17x279xbf16, #tpu.memory_space<vmem>>, vector<17x279xbf16>
    %11 = arith.truncf %9 : vector<279x256xf32> to vector<279x256xbf16>
    %cst_9 = arith.constant dense<0.000000e+00> : vector<17x256xf32>
    %12 = tpu.matmul %10, %11, %cst_9 {dimension_numbers = #tpu.dot_dimension_numbers<[1], [0], [0], [1], [0, 0, 1, 1], [], []>} : vector<17x279xbf16>, vector<279x256xbf16>, vector<17x256xf32> -> vector<17x256xf32>
    %c0_10 = arith.constant 0 : index
    %c0_11 = arith.constant 0 : index
    %13 = vector.load %arg6[%c0_10, %c0_11] : memref<17x1xf32, #tpu.memory_space<vmem>>, vector<17x1xf32>
    %14 = vector.broadcast %13 : vector<17x1xf32> to vector<17x256xf32>
    %15 = arith.addf %12, %14 : vector<17x256xf32>
    %c0_12 = arith.constant 0 : index
    %c0_13 = arith.constant 0 : index
    %c0_14 = arith.constant 0 : index
    %16 = vector.load %arg7[%c0_12, %c0_13, %c0_14] : memref<1x17x256xf32, #tpu.memory_space<vmem>>, vector<1x17x256xf32>
    %17 = vector.shape_cast %16 : vector<1x17x256xf32> to vector<17x256xf32>
    %18 = vector.shape_cast %15 : vector<17x256xf32> to vector<1x17x256xf32>
    tpu.vector_store %arg7[%c0_12, %c0_13, %c0_14], %18 {strides = array<i32>} : memref<1x17x256xf32, #tpu.memory_space<vmem>>, vector<1x17x256xf32>,
    return
  }
  func.func @transform_0(%arg0: i32, %arg1: i32) -> (i32, i32, i32) {
    %c0_i32 = arith.constant 0 : i32
    %c0_i32_0 = arith.constant 0 : i32
    return %arg0, %c0_i32, %arg1 : i32, i32, i32
  }
  func.func @transform_1(%arg0: i32, %arg1: i32) -> (i32, i32) {
    %c0_i32 = arith.constant 0 : i32
    %c0_i32_0 = arith.constant 0 : i32
    %c0_i32_1 = arith.constant 0 : i32
    return %c0_i32, %c0_i32_0 : i32, i32
  }
  func.func @transform_2(%arg0: i32, %arg1: i32) -> (i32, i32) {
    %c0_i32 = arith.constant 0 : i32
    %c0_i32_0 = arith.constant 0 : i32
    %c0_i32_1 = arith.constant 0 : i32
    return %c0_i32, %c0_i32_0 : i32, i32
  }
  func.func @transform_3(%arg0: i32, %arg1: i32) -> (i32, i32) {
    %c0_i32 = arith.constant 0 : i32
    %c0_i32_0 = arith.constant 0 : i32
    %c0_i32_1 = arith.constant 0 : i32
    return %c0_i32, %c0_i32_0 : i32, i32
  }
  func.func @transform_4(%arg0: i32, %arg1: i32) -> (i32, i32) {
    %c0_i32 = arith.constant 0 : i32
    %c0_i32_0 = arith.constant 0 : i32
    %c0_i32_1 = arith.constant 0 : i32
    return %c0_i32, %c0_i32_0 : i32, i32
  }
  func.func @transform_5(%arg0: i32, %arg1: i32) -> (i32, i32, i32) {
    %c0_i32 = arith.constant 0 : i32
    %c0_i32_0 = arith.constant 0 : i32
    return %arg0, %c0_i32, %arg1 : i32, i32, i32
  }
}

</mosaic_0001>

<bundles_post_ra>
// kernel: uhrnet_head_pallas.1
= control target key start
LH: loop header
LB: loop body
LE: loop exit
PB: predicated region body
PF: predicated region fallthrough
CT: control target
= control target key end

     0   :  { %s2353_s18 = smov 0   ;;  %s2355_s19 = smov 0   ;;  %s3747_s0 = inlined_call_operand.vmem [shape: f32[2,279,256], index: 0, kind: input, shape index: {}]   ;;  %s3748_s1 = inlined_call_operand.vmem [shape: bf16[279,279], index: 1, kind: input, shape index: {}]   ;;  %s3749_s2 = inlined_call_operand.vmem [shape: f32[279,1], index: 2, kind: input, shape index: {}]   ;;  %s3750_s3 = inlined_call_operand.vmem [shape: bf16[17,279], index: 3, kind: input, shape index: {}]   ;;  %s3751_s4 = inlined_call_operand.vmem [shape: f32[17,1], index: 4, kind: input, shape index: {}]   ;;  %s3752_s5 = inlined_call_operand.vmem [shape: f32[2,17,256], index: 5, kind: output, shape index: {}]  }
   0x1   :  { %s2357_s20 = smov 0  }
   0x2 LB: > { %s27_s21 = sadd.s32 1, %s2315_s19  ;;  %p1941_p0 = scmp.ge.s32.totalorder %s2319_s20, 1  ;;  %s2319_s20 = sphi %s2357_s20, %s15_s20   ;;  %s2315_s19 = sphi %s2355_s19, %s3952_s19   ;;  %s2311_s18 = sphi %s2353_s18, %s3951_s18  }
   0x3   : > { %p29_p1 = scmp.ge.s32.totalorder %s27_s21, 2  ;;  %p208_p2 = scmp.lt.s32.totalorder %s2319_s20, 3 }
   0x5   : > { %s3954_s21 = smov (%p29_p1, %s27_s21), 0  ;;  %p209_p3 = pnand %p1941_p0, %p208_p2 }
   0x7   : > { %212 = sbr.rel (%p209_p3) target bundleno = 816 (0x330), region = 40 }
   0xc   : > { %p245_p4 = scmp.lt.s32.totalorder %s2311_s18, 1  ;;  %vm971_vm0 = vcmask 1042432   ;;  %v471_v0 = vld [vmem:[%s3749_s2 + $0xf0] sm:$0xff]  ;;  %v2321_v1 = vmov 0   ;;  %v469_v2 = vld [vmem:[%s3749_s2 + $0xe0] sm:$0xff]  ;;  %vm972_vm1 = vcmask 1043456  }
   0xd   : > { %2295 = vset.pattern.permute.xlu1 %v2321_v1  ;;  %2294 = vset.pattern.permute.xlu0 %v2321_v1  ;;  %v2322_v3 = vmov 65535   ;;  %v472_v17 = vld [vmem:[%s3749_s2 + $0xf8] sm:$0xff]  ;;  %v470_v18 = vld [vmem:[%s3749_s2 + $0xe8] sm:$0xff]  ;;  %v2204_v23 = vld [vmem:[%s3748_s1 + $0x10] sm:$0xf0]  ;;  %vm916_vm2 = vcmask 187392  }
   0xe   : > { %s3956_s18 = smov (!%p245_p4, %s2311_s18), 1  ;;  %v973_v4 = vsel %vm971_vm0, 4294967295, %v2322_v3  ;;  %628 = vperm.xlu0 %2294, %v471_v0   ;;  %618 = vperm.xlu1 %2295, %v469_v2   ;;  %v1954_v21 = vld [vmem:[%s3748_s1 + $0x8] sm:$0xf]  ;;  %v2110_v24 = vld [vmem:[%s3748_s1 + $0x140] sm:$0xf] }
   0xf   : > { %s2266_s26 = smul.u32 560, %s3956_s18  ;;  %2296 = vset.pattern.permute.xlu2 %v2321_v1  ;;  %v2388_v8 = vsel %vm972_vm1, %v973_v4, 0  ;;  %v2243_v25 = vld [vmem:[%s3748_s1 + $0x148] sm:$0xf0]  ;;  %v2415_v27 = vor.u32 %v2204_v23, %v1954_v21  ;;  %v455_v31 = vld [vmem:[%s3749_s2 + $0x70] sm:$0xff]  ;;  %v468_v33 = vld [vmem:[%s3749_s2 + $0xd8] sm:$0xff] }
  0x10   : > { %3789 = vst [vmem:[#allocation2_spill] sm:$0xff] %v2388_v8  ;;  %v2419_v30 = vor.u32 %v2243_v25, %v2110_v24  ;;  %548 = vperm.xlu2 %2296, %v455_v31   ;;  %v467_v34 = vld [vmem:[%s3749_s2 + $0xd0] sm:$0xff]  ;;  %v456_v38 = vld [vmem:[%s3749_s2 + $0x78] sm:$0xff]  ;;  %v465_v42 = vld [vmem:[%s3749_s2 + $0xc0] sm:$0xff]  ;;  %s2267_s17 = smul.u32 48, %s3956_s18 }
  0x11   : > { %s2383_s29 = scalar_lea.vmem %s3747_s0, %s2266_s26  ;;  %v454_v43 = vld [vmem:[%s3749_s2 + $0x68] sm:$0xff]  ;;  %v1966_v46 = vld [vmem:[%s3748_s1 + $0x20] sm:$0xf]  ;;  %v2122_v48 = vld [vmem:[%s3748_s1 + $0x158] sm:$0xf] }
  0x12   : > { %v293_v5 = vld [vmem:[%s2383_s29 + $0xe0] sm:$0xff]  ;;  %v295_v6 = vld [vmem:[%s2383_s29 + $0xf0] sm:$0xff]  ;;  %3790 = vst [vmem:[#allocation3_spill] sm:$0xff] %v2419_v30  ;;  %v2207_v47 = vld [vmem:[%s3748_s1 + $0x28] sm:$0xf0]  ;;  %s3728_s24 = scalar_lea.vmem %s3752_s5, %s2267_s17 }
  0x13   : > { %v333_v7 = vld [vmem:[%s2383_s29 + $0x220] sm:$0x7f]  ;;  %v349_v9 = vpack.c.bf16 %v295_v6, %v293_v5  ;;  %v291_v12 = vld [vmem:[%s2383_s29 + $0xd0] sm:$0xff]  ;;  %v2464_v52 = vor.u32 %v2207_v47, %v1966_v46  ;;  %v2239_v57 = vld [vmem:[%s3748_s1 + $0x128] sm:$0xf0] }
  0x14   : > { %v369_v10 = vpack.c.bf16 %v333_v7, %v333_v7  ;;  %v289_v11 = vld [vmem:[%s2383_s29 + $0xc0] sm:$0xff]  ;;  %v331_v14 = vld [vmem:[%s2383_s29 + $0x210] sm:$0xff]  ;;  %v2203_v60 = vld [vmem:[%s3748_s1 + $0x8] sm:$0xf0] }
  0x15   : > { %v329_v13 = vld [vmem:[%s2383_s29 + $0x200] sm:$0xff]  ;;  %2256 = vmatpush.bf16.msra.mxu1 %v349_v9  ;;  %981 = vmatpush.bf16.msra.mxu0 %v349_v9  ;;  %v347_v16 = vpack.c.bf16 %v291_v12, %v289_v11  ;;  %v287_v20 = vld [vmem:[%s2383_s29 + $0xb0] sm:$0xff]  ;;  %v452_v62 = vld [vmem:[%s3749_s2 + $0x58] sm:$0xff] }
  0x16   : > { %v976_v15 = vand.u32 %v2388_v8, %v369_v10  ;;  %v285_v19 = vld [vmem:[%s2383_s29 + $0xa0] sm:$0xff]  ;;  %v367_v22 = vpack.c.bf16 %v331_v14, %v329_v13  ;;  %633 = vperm.xlu0 %2294, %v472_v17   ;;  %623 = vperm.xlu1 %2295, %v470_v18   ;;  %v283_v29 = vld [vmem:[%s2383_s29 + $0x90] sm:$0xff]  ;;  %v294_v63 = vld [vmem:[%s2383_s29 + $0xe8] sm:$0xff] }
  0x17   : > { %v345_v26 = vpack.c.bf16 %v287_v20, %v285_v19  ;;  %v281_v28 = vld [vmem:[%s2383_s29 + $0x80] sm:$0xff]  ;;  %v279_v36 = vld [vmem:[%s2383_s29 + $0x70] sm:$0xff]  ;;  %v296_v0 = vld [vmem:[%s2383_s29 + $0xf8] sm:$0xff] }
  0x18   : > { %1183 = vmatpush.bf16.msra.mxu2 %v976_v15  ;;  %2264 = vmatpush.bf16.msra.mxu3 %v976_v15  ;;  %v343_v32 = vpack.c.bf16 %v283_v29, %v281_v28  ;;  %v277_v35 = vld [vmem:[%s2383_s29 + $0x60] sm:$0xff]  ;;  %v275_v40 = vld [vmem:[%s2383_s29 + $0x50] sm:$0xff]  ;;  %v350_v3 = vpack.c.bf16 %v296_v0, %v294_v63  ;;  %v466_v4 = vld [vmem:[%s3749_s2 + $0xc8] sm:$0xff] }
  0x19   : > { %2257 = vmatpush.bf16.msra.mxu1 %v347_v16  ;;  %982 = vmatpush.bf16.msra.mxu0 %v347_v16  ;;  %v341_v37 = vpack.c.bf16 %v279_v36, %v277_v35  ;;  %v273_v39 = vld [vmem:[%s2383_s29 + $0x40] sm:$0xff]  ;;  %v271_v45 = vld [vmem:[%s2383_s29 + $0x30] sm:$0xff]  ;;  %v290_v5 = vld [vmem:[%s2383_s29 + $0xc8] sm:$0xff] }
  0x1a   : > { %553 = vperm.xlu2 %2296, %v456_v38   ;;  %v339_v41 = vpack.c.bf16 %v275_v40, %v273_v39  ;;  %v269_v44 = vld [vmem:[%s2383_s29 + $0x20] sm:$0xff]  ;;  %v267_v54 = vld [vmem:[%s2383_s29 + $0x10] sm:$0xff]  ;;  %v292_v6 = vld [vmem:[%s2383_s29 + $0xd8] sm:$0xff] }
  0x1b   : > { %v2246_v49 = vld [vmem:[%s3748_s1 + $0x160] sm:$0xf0]  ;;  %v337_v50 = vpack.c.bf16 %v271_v45, %v269_v44  ;;  %v2090_v56 = vld [vmem:[%s3748_s1 + $0x120] sm:$0xf]  ;;  %v451_v61 = vld [vmem:[%s3749_s2 + $0x50] sm:$0xff]  ;;  %v348_v7 = vpack.c.bf16 %v292_v6, %v290_v5 }
  0x1c   : > { %1184 = vmatpush.bf16.msra.mxu2 %v367_v22  ;;  %2265 = vmatpush.bf16.msra.mxu3 %v367_v22  ;;  %v453_v51 = vld [vmem:[%s3749_s2 + $0x60] sm:$0xff]  ;;  %v2468_v55 = vor.u32 %v2246_v49, %v2122_v48  ;;  %v2494_v1 = vor.u32 %v2239_v57, %v2090_v56  ;;  %v286_v9 = vld [vmem:[%s2383_s29 + $0xa8] sm:$0xff]  ;;  %v464_v10 = vld [vmem:[%s3749_s2 + $0xb8] sm:$0xff] }
  0x1d   : > { %2258 = vmatpush.bf16.msra.mxu1 %v345_v26  ;;  %983 = vmatpush.bf16.msra.mxu0 %v345_v26  ;;  %v265_v53 = vld [vmem:[%s2383_s29] sm:$0xff]  ;;  %v288_v12 = vld [vmem:[%s2383_s29 + $0xb8] sm:$0xff]  ;;  %v2134_v16 = vld [vmem:[%s3748_s1 + $0x170] sm:$0xf] }
  0x1e   : > { %613 = vperm.xlu1 %2295, %v468_v33   ;;  %608 = vperm.xlu0 %2294, %v467_v34   ;;  %3791 = vst [vmem:[#allocation4_spill] sm:$0xff] %v2468_v55  ;;  %v1946_v58 = vld [vmem:[%s3748_s1] sm:$0xf]  ;;  %v335_v59 = vpack.c.bf16 %v267_v54, %v265_v53  ;;  %v1978_v13 = vld [vmem:[%s3748_s1 + $0x38] sm:$0xf]  ;;  %v346_v14 = vpack.c.bf16 %v288_v12, %v286_v9  ;;  %v463_v20 = vld [vmem:[%s3749_s2 + $0xb0] sm:$0xff] }
  0x1f   : > { %2148 = vmatmul.msk.bf16.vlgmr.msra.gmra.mxu2 %vm916_vm2, %v2415_v27  ;;  %2161 = vmatmul.msk.bf16.vlgmr.msra.gmra.mxu3 %vm916_vm2, %v2419_v30  ;;  %v2496_v2 = vor.u32 %v2203_v60, %v1946_v58  ;;  %v449_v11 = vld [vmem:[%s3749_s2 + $0x40] sm:$0xff]  ;;  %v2249_v17 = vld [vmem:[%s3748_s1 + $0x178] sm:$0xf0]  ;;  %v282_v21 = vld [vmem:[%s2383_s29 + $0x88] sm:$0xff] }
  0x20   : > { %1275 = vmatpush.bf16.msrb.mxu3 %v350_v3  ;;  %v2210_v15 = vld [vmem:[%s3748_s1 + $0x40] sm:$0xf0]  ;;  %v2527_v19 = vor.u32 %v2249_v17, %v2134_v16  ;;  %v284_v22 = vld [vmem:[%s2383_s29 + $0x98] sm:$0xff]  ;;  %v462_v31 = vld [vmem:[%s3749_s2 + $0xa8] sm:$0xff] }
  0x21   : > { %2259 = vmatpush.bf16.msra.mxu1 %v343_v32  ;;  %984 = vmatpush.bf16.msra.mxu0 %v343_v32  ;;  %v2525_v18 = vor.u32 %v2210_v15, %v1978_v13  ;;  %v2102_v23 = vld [vmem:[%s3748_s1 + $0x138] sm:$0xf]  ;;  %v2242_v24 = vld [vmem:[%s3748_s1 + $0x140] sm:$0xf0]  ;;  %v344_v26 = vpack.c.bf16 %v284_v22, %v282_v21  ;;  %v278_v32 = vld [vmem:[%s2383_s29 + $0x68] sm:$0xff] }
  0x22   : > { %538 = vperm.xlu2 %2296, %v453_v51   ;;  %3792 = vst [vmem:[#allocation5_spill] sm:$0xff] %v2527_v19  ;;  %v461_v25 = vld [vmem:[%s3749_s2 + $0xa0] sm:$0xff]  ;;  %v1958_v28 = vld [vmem:[%s3748_s1 + $0x18] sm:$0xf]  ;;  %v2558_v35 = vor.u32 %v2242_v24, %v2102_v23  ;;  %v274_v38 = vld [vmem:[%s2383_s29 + $0x48] sm:$0xff] }
  0x23   : > { %v2206_v29 = vld [vmem:[%s3748_s1 + $0x20] sm:$0xf0]  ;;  %v280_v33 = vld [vmem:[%s2383_s29 + $0x78] sm:$0xff]  ;;  %v1990_v45 = vld [vmem:[%s3748_s1 + $0x50] sm:$0xf] }
  0x24   : > { %1276 = vmatpush.bf16.msrb.mxu3 %v348_v7  ;;  %v342_v34 = vpack.c.bf16 %v280_v33, %v278_v32  ;;  %v2560_v36 = vor.u32 %v2206_v29, %v1958_v28  ;;  %v276_v39 = vld [vmem:[%s2383_s29 + $0x58] sm:$0xff]  ;;  %v2146_v47 = vld [vmem:[%s3748_s1 + $0x188] sm:$0xf]  ;;  %v2252_v48 = vld [vmem:[%s3748_s1 + $0x190] sm:$0xf0] }
  0x25   : > { %2260 = vmatpush.bf16.msra.mxu1 %v341_v37  ;;  %985 = vmatpush.bf16.msra.mxu0 %v341_v37  ;;  %v450_v37 = vld [vmem:[%s3749_s2 + $0x48] sm:$0xff]  ;;  %v340_v40 = vpack.c.bf16 %v276_v39, %v274_v38  ;;  %v272_v44 = vld [vmem:[%s2383_s29 + $0x38] sm:$0xff]  ;;  %v2591_v51 = vor.u32 %v2252_v48, %v2146_v47  ;;  %v447_v53 = vld [vmem:[%s3749_s2 + $0x30] sm:$0xff] }
  0x26   : > { %598 = vperm.xlu1 %2295, %v465_v42   ;;  %543 = vperm.xlu0 %2294, %v454_v43   ;;  %v448_v42 = vld [vmem:[%s3749_s2 + $0x38] sm:$0xff]  ;;  %v459_v43 = vld [vmem:[%s3749_s2 + $0x90] sm:$0xff]  ;;  %v266_v54 = vld [vmem:[%s2383_s29 + $0x8] sm:$0xff] }
  0x27   : > { %v2213_v46 = vld [vmem:[%s3748_s1 + $0x58] sm:$0xf0]  ;;  %3793 = vst [vmem:[#allocation6_spill] sm:$0xff] %v2591_v51  ;;  %v2114_v57 = vld [vmem:[%s3748_s1 + $0x150] sm:$0xf]  ;;  %v446_v63 = vld [vmem:[%s3749_s2 + $0x28] sm:$0xff] }
  0x28   : > { %1277 = vmatpush.bf16.msrb.mxu3 %v346_v14  ;;  %v268_v56 = vld [vmem:[%s2383_s29 + $0x18] sm:$0xff]  ;;  %v440_v5 = vld [vmem:[%s3748_s1 + $0x1a0] sm:$0xf]  ;;  %v458_v6 = vld [vmem:[%s3749_s2 + $0x88] sm:$0xff] }
  0x29   : > { %2261 = vmatpush.bf16.msra.mxu1 %v339_v41  ;;  %986 = vmatpush.bf16.msra.mxu0 %v339_v41  ;;  %v270_v41 = vld [vmem:[%s2383_s29 + $0x28] sm:$0xff]  ;;  %v2245_v58 = vld [vmem:[%s3748_s1 + $0x158] sm:$0xf0]  ;;  %v336_v60 = vpack.c.bf16 %v268_v56, %v266_v54  ;;  %v325_v7 = vld [vmem:[%s2383_s29 + $0x1e0] sm:$0xff]  ;;  %v825_v14 = vunpack.c.l.b16 %v440_v5 }
  0x2a   : > { %603 = vperm.xlu2 %2296, %v466_v4   ;;  %v338_v49 = vpack.c.bf16 %v272_v44, %v270_v41  ;;  %v2620_v0 = vor.u32 %v2245_v58, %v2114_v57  ;;  %v460_v4 = vld [vmem:[%s3749_s2 + $0x98] sm:$0xff]  ;;  %v327_v9 = vld [vmem:[%s2383_s29 + $0x1f0] sm:$0xff]  ;;  %v321_v12 = vld [vmem:[%s2383_s29 + $0x1c0] sm:$0xff] }
  0x2b   : > { %v323_v13 = vld [vmem:[%s2383_s29 + $0x1d0] sm:$0xff]  ;;  %v2002_v15 = vld [vmem:[%s3748_s1 + $0x68] sm:$0xf]  ;;  %v2652_v23 = vpack.c.b16 %v825_v14, %v825_v14  ;;  %v457_v24 = vld [vmem:[%s3749_s2 + $0x80] sm:$0xff] }
  0x2c   : > { %1278 = vmatpush.bf16.msrb.mxu3 %v344_v26  ;;  %v2216_v16 = vld [vmem:[%s3748_s1 + $0x70] sm:$0xf0]  ;;  %v363_v17 = vpack.c.bf16 %v323_v13, %v321_v12  ;;  %v2126_v26 = vld [vmem:[%s3748_s1 + $0x168] sm:$0xf]  ;;  %v441_v29 = vld [vmem:[%s3749_s2] sm:$0xff] }
  0x2d   : > { %2262 = vmatpush.bf16.msra.mxu1 %v337_v50  ;;  %987 = vmatpush.bf16.msra.mxu0 %v337_v50  ;;  %v2589_v50 = vor.u32 %v2213_v46, %v1990_v45  ;;  %v319_v21 = vld [vmem:[%s2383_s29 + $0x1b0] sm:$0xff]  ;;  %v2650_v22 = vor.u32 %v2216_v16, %v2002_v15  ;;  %3794 = vst [vmem:[#allocation7_spill] sm:$0xff] %v2652_v23  ;;  %v442_v33 = vld [vmem:[%s3749_s2 + $0x8] sm:$0xff]  ;;  %v444_v41 = vld [vmem:[%s3749_s2 + $0x18] sm:$0xff] }
  0x2e   : > { %528 = vperm.xlu0 %2294, %v451_v61   ;;  %533 = vperm.xlu1 %2295, %v452_v62   ;;  %v1970_v61 = vld [vmem:[%s3748_s1 + $0x30] sm:$0xf]  ;;  %v2209_v62 = vld [vmem:[%s3748_s1 + $0x38] sm:$0xf0]  ;;  %v2248_v28 = vld [vmem:[%s3748_s1 + $0x170] sm:$0xf0] }
  0x2f   : > { %2149 = vmatmul.msk.bf16.gmra.mxu2 %vm916_vm2, %v2464_v52  ;;  %2162 = vmatmul.msk.bf16.gmra.mxu3 %vm916_vm2, %v2468_v55  ;;  %v2622_v3 = vor.u32 %v2209_v62, %v1970_v61  ;;  %v2212_v32 = vld [vmem:[%s3748_s1 + $0x50] sm:$0xf0]  ;;  %v2681_v39 = vor.u32 %v2248_v28, %v2126_v26  ;;  %v473_v44 = vld [vmem:[%s3749_s2 + $0x100] sm:$0xff]  ;;  %v474_v46 = vld [vmem:[%s3749_s2 + $0x108] sm:$0xff] }
  0x30   : > { %1279 = vmatpush.bf16.msrb.mxu3 %v342_v34  ;;  %v313_v34 = vld [vmem:[%s2383_s29 + $0x180] sm:$0xff]  ;;  %v307_v48 = vld [vmem:[%s2383_s29 + $0x150] sm:$0xff]  ;;  %v2251_v61 = vld [vmem:[%s3748_s1 + $0x188] sm:$0xf0] }
  0x31   : > { %2263 = vmatpush.bf16.msra.mxu1 %v335_v59  ;;  %988 = vmatpush.bf16.msra.mxu0 %v335_v59  ;;  %v445_v59 = vld [vmem:[%s3749_s2 + $0x20] sm:$0xff]  ;;  %v303_v57 = vld [vmem:[%s2383_s29 + $0x130] sm:$0xff]  ;;  %v2006_v14 = vld [vmem:[%s3748_s1 + $0x78] sm:$0xf] }
  0x32   : > { %588 = vperm.xlu2 %2296, %v463_v20   ;;  %v317_v20 = vld [vmem:[%s2383_s29 + $0x1a0] sm:$0xff]  ;;  %v299_v5 = vld [vmem:[%s2383_s29 + $0x110] sm:$0xff] }
  0x33   : > { %v305_v47 = vld [vmem:[%s2383_s29 + $0x140] sm:$0xff]  ;;  %v1948_v28 = vld [vmem:[%s3748_s1 + $0xc] sm:$0xf0] }
  0x34   : > { %1049 = vmatmul.bf16.vlgmr.msra.gmra.mxu1 %v2494_v1  ;;  %989 = vmatmul.bf16.vlgmr.msra.gmra.mxu0 %v2496_v2  ;;  %v355_v54 = vpack.c.bf16 %v307_v48, %v305_v47  ;;  %v301_v56 = vld [vmem:[%s2383_s29 + $0x120] sm:$0xff]  ;;  %v2224_v47 = vld [vmem:[%s3748_s1 + $0xb0] sm:$0xf0] }
  0x35   : > { %1280 = vmatpush.bf16.msrb.mxu3 %v340_v40  ;;  %v1994_v62 = vld [vmem:[%s3748_s1 + $0x60] sm:$0xf]  ;;  %v2218_v15 = vld [vmem:[%s3748_s1 + $0x80] sm:$0xf0] }
  0x36   : > { %593 = vperm.xlu0 %2294, %v464_v10   ;;  %518 = vperm.xlu1 %2295, %v449_v11   ;;  %v365_v10 = vpack.c.bf16 %v327_v9, %v325_v7  ;;  %v443_v11 = vld [vmem:[%s3749_s2 + $0x10] sm:$0xff]  ;;  %v2202_v26 = vld [vmem:[%s3748_s1 + $0x4] sm:$0xf] }
  0x38   : > { %1079 = vmatpush.bf16.msrb.mxu1 %v365_v10  ;;  %v2026_v10 = vld [vmem:[%s3748_s1 + $0x98] sm:$0xf] }
  0x39   : > { %1281 = vmatpush.bf16.msrb.mxu3 %v338_v49  ;;  %v2014_v49 = vld [vmem:[%s3748_s1 + $0x80] sm:$0xf] }
  0x3a   : > { %523 = vperm.xlu2 %2296, %v450_v37   ;;  %v315_v37 = vld [vmem:[%s2383_s29 + $0x190] sm:$0xff] }
  0x3b   : > { %v359_v38 = vpack.c.bf16 %v315_v37, %v313_v34 }
  0x3c   : > { %1080 = vmatpush.bf16.msrb.mxu1 %v363_v17  ;;  %v2758_v17 = vor.u32 %v2218_v15, %v2006_v14  ;;  %v328_v14 = vld [vmem:[%s2383_s29 + $0x1f8] sm:$0xff] }
  0x3d   : > { %1282 = vmatpush.bf16.msrb.mxu3 %v336_v60  ;;  %v2138_v60 = vld [vmem:[%s3748_s1 + $0x180] sm:$0xf] }
  0x3e   : > { %578 = vperm.xlu0 %2294, %v461_v25   ;;  %583 = vperm.xlu1 %2295, %v462_v31   ;;  %v361_v25 = vpack.c.bf16 %v319_v21, %v317_v20  ;;  %v1982_v31 = vld [vmem:[%s3748_s1 + $0x48] sm:$0xf]  ;;  %v2727_v7 = vor.u32 %v2251_v61, %v2138_v60  ;;  %v475_v20 = vld [vmem:[%s3749_s2 + $0x110] sm:$0x7f] }
  0x3f   : > { %2150 = vmatmul.msk.bf16.gmra.mxu2 %vm916_vm2, %v2525_v18  ;;  %2163 = vmatmul.msk.bf16.gmra.mxu3 %vm916_vm2, %v2527_v19  ;;  %v2683_v40 = vor.u32 %v2212_v32, %v1982_v31  ;;  %v2038_v21 = vld [vmem:[%s3748_s1 + $0xb0] sm:$0xf]  ;;  %v2221_v31 = vld [vmem:[%s3748_s1 + $0x98] sm:$0xf0]  ;;  %v2790_v32 = vor.u32 %v2202_v26, %v1948_v28 }
  0x40   : > { %1081 = vmatpush.bf16.msrb.mxu1 %v361_v25  ;;  %3795 = vst [vmem:[#allocation8_spill] sm:$0xff] %v2727_v7 }
  0x42   : > { %508 = vperm.xlu2 %2296, %v447_v53   ;;  %v2219_v53 = vld [vmem:[%s3748_s1 + $0x88] sm:$0xf0] }
  0x43   : > { %v2708_v58 = vor.u32 %v2219_v53, %v2014_v49 }
  0x44   : > { %1054 = vmatmul.bf16.gmra.mxu1 %v2558_v35  ;;  %994 = vmatmul.bf16.gmra.mxu0 %v2560_v36 }
  0x45   : > { %1082 = vmatpush.bf16.msrb.mxu1 %v359_v38  ;;  %v2050_v38 = vld [vmem:[%s3748_s1 + $0xc8] sm:$0xf] }
  0x46   : > { %513 = vperm.xlu0 %2294, %v448_v42   ;;  %568 = vperm.xlu1 %2295, %v459_v43   ;;  %v309_v42 = vld [vmem:[%s2383_s29 + $0x160] sm:$0xff]  ;;  %v311_v43 = vld [vmem:[%s2383_s29 + $0x170] sm:$0xff] }
  0x47   : > { %v357_v45 = vpack.c.bf16 %v311_v43, %v309_v42  ;;  %v2205_v43 = vld [vmem:[%s3748_s1 + $0x1c] sm:$0xf] }
  0x49   : > { %1083 = vmatpush.bf16.msrb.mxu1 %v357_v45  ;;  %v1960_v45 = vld [vmem:[%s3748_s1 + $0x24] sm:$0xf0] }
  0x4a   : > { %573 = vperm.xlu2 %2296, %v460_v4   ;;  %v297_v4 = vld [vmem:[%s2383_s29 + $0x100] sm:$0xff]  ;;  %v2827_v48 = vor.u32 %v2205_v43, %v1960_v45  ;;  %v318_v45 = vld [vmem:[%s2383_s29 + $0x1a8] sm:$0xff] }
  0x4d   : > { %1084 = vmatpush.bf16.msrb.mxu1 %v355_v54 }
  0x4e   : > { %498 = vperm.xlu0 %2294, %v445_v59   ;;  %503 = vperm.xlu1 %2295, %v446_v63   ;;  %v353_v59 = vpack.c.bf16 %v303_v57, %v301_v56  ;;  %v2215_v63 = vld [vmem:[%s3748_s1 + $0x68] sm:$0xf0] }
  0x4f   : > { %2151 = vmatmul.msk.bf16.gmra.mxu2 %vm916_vm2, %v2589_v50  ;;  %2164 = vmatmul.msk.bf16.gmra.mxu3 %vm916_vm2, %v2591_v51  ;;  %v2729_v9 = vor.u32 %v2215_v63, %v1994_v62  ;;  %v306_v51 = vld [vmem:[%s2383_s29 + $0x148] sm:$0xff] }
  0x51   : > { %1085 = vmatpush.bf16.msrb.mxu1 %v353_v59  ;;  %v2231_v59 = vld [vmem:[%s3748_s1 + $0xe8] sm:$0xf0] }
  0x52   : > { %558 = vperm.xlu2 %2296, %v457_v24  }
  0x54   : > { %1059 = vmatmul.bf16.gmra.mxu1 %v2620_v0  ;;  %999 = vmatmul.bf16.gmra.mxu0 %v2622_v3 }
  0x56   : > { %563 = vperm.xlu0 %2294, %v458_v6   ;;  %488 = vperm.xlu1 %2295, %v443_v11   ;;  %v351_v6 = vpack.c.bf16 %v299_v5, %v297_v4  ;;  %v2742_v11 = vld [vmem:[%s3748_s1 + $0x198] sm:$0xff]  ;;  %v2208_v4 = vld [vmem:[%s3748_s1 + $0x34] sm:$0xf]  ;;  %v1972_v5 = vld [vmem:[%s3748_s1 + $0x3c] sm:$0xf0] }
  0x57   : > { %3796 = vst [vmem:[#allocation9_spill] sm:$0xff] %v2742_v11  ;;  %v823_v13 = vunpack.c.l.b16 %v2742_v11 }
  0x58   : > { %1086 = vmatpush.bf16.msrb.mxu1 %v351_v6  ;;  %v2042_v6 = vld [vmem:[%s3748_s1 + $0xc0] sm:$0xf] }
  0x59   : > { %v2756_v16 = vpack.c.b16 %v823_v13, %v823_v13  ;;  %v326_v13 = vld [vmem:[%s2383_s29 + $0x1e8] sm:$0xff] }
  0x5a   : > { %493 = vperm.xlu2 %2296, %v444_v41   ;;  %v366_v15 = vpack.c.bf16 %v328_v14, %v326_v13 }
  0x5b   : > { %3797 = vst [vmem:[#allocation10_spill] sm:$0xff] %v2756_v16 }
  0x5c   : > { %1373 = vmatpush.bf16.msrb.mxu2 %v366_v15  ;;  %v314_v15 = vld [vmem:[%s2383_s29 + $0x188] sm:$0xff] }
  0x5e   : > { %478 = vperm.xlu0 %2294, %v441_v29   ;;  %483 = vperm.xlu1 %2295, %v442_v33   ;;  %v2018_v29 = vld [vmem:[%s3748_s1 + $0x90] sm:$0xf] }
  0x5f   : > { %2152 = vmatmul.msk.bf16.gmra.mxu2 %vm916_vm2, %v2650_v22  ;;  %2165 = vmatmul.msk.bf16.gmra.mxu3 %vm916_vm2, %v2652_v23  ;;  %v2792_v33 = vor.u32 %v2221_v31, %v2018_v29 }
  0x62   : > { %648 = vperm.xlu2 %2296, %v475_v20   ;;  %v2874_v20 = vor.u32 %v2208_v4, %v1972_v5 }
  0x64   : > { %1064 = vmatmul.bf16.gmra.mxu1 %v2681_v39  ;;  %1004 = vmatmul.bf16.gmra.mxu0 %v2683_v40 }
  0x66   : > { %638 = vperm.xlu0 %2294, %v473_v44   ;;  %643 = vperm.xlu1 %2295, %v474_v46   ;;  %v2030_v46 = vld [vmem:[%s3748_s1 + $0xa8] sm:$0xf] }
  0x67   : > { %v2829_v49 = vor.u32 %v2224_v47, %v2030_v46  ;;  %v320_v46 = vld [vmem:[%s2383_s29 + $0x1b8] sm:$0xff] }
  0x68   : > { %v362_v47 = vpack.c.bf16 %v320_v46, %v318_v45  ;;  %v2211_v45 = vld [vmem:[%s3748_s1 + $0x4c] sm:$0xf]  ;;  %v1984_v46 = vld [vmem:[%s3748_s1 + $0x54] sm:$0xf0] }
  0x69   : > { %v2937_v23 = vor.u32 %v2211_v45, %v1984_v46  ;;  %v302_v46 = vld [vmem:[%s2383_s29 + $0x128] sm:$0xff] }
  0x6a   : > { %v2851_v62 = vpop.permute.xlu2 %548 }
  0x6b   : > { %3808 = vst [vmem:[#allocation21_spill] sm:$0xff] %v2851_v62 }
  0x6f   : > { %2153 = vmatmul.msk.bf16.gmra.mxu2 %vm916_vm2, %v2708_v58  ;;  %1283 = vmatmul.bf16.vlgmr.msrb.gmra.mxu3 %v2496_v2  ;;  %v2222_v2 = vld [vmem:[%s3748_s1 + $0xa0] sm:$0xf0] }
  0x70   : > { %v2744_v12 = vor.u32 %v2222_v2, %v2026_v10  ;;  %v2227_v10 = vld [vmem:[%s3748_s1 + $0xc8] sm:$0xf0] }
  0x74   : > { %1069 = vmatmul.bf16.gmra.mxu1 %v2727_v7  ;;  %1009 = vmatmul.bf16.gmra.mxu0 %v2729_v9  ;;  %v2890_v43 = vpop.permute.xlu2 %553 }
  0x75   : > { %3813 = vst [vmem:[#allocation26_spill] sm:$0xff] %v2890_v43 }
  0x7f   : > { %2154 = vmatmul.msk.bf16.gmra.mxu2 %vm916_vm2, %v2744_v12  ;;  %1288 = vmatmul.bf16.gmra.mxu3 %v2560_v36  ;;  %v2225_v36 = vld [vmem:[%s3748_s1 + $0xb8] sm:$0xf0] }
  0x80   : > { %v2771_v24 = vpop.permute.xlu0 %628  ;;  %v2773_v25 = vor.u32 %v2225_v36, %v2038_v21  ;;  %v2794_v34 = vpop.permute.xlu1 %618  ;;  %v2876_v21 = vor.u32 %v2227_v10, %v2042_v6 }
  0x81   : > { %3798 = vst [vmem:[#allocation11_spill] sm:$0xff] %v2771_v24 }
  0x82   : > { %3799 = vst [vmem:[#allocation12_spill] sm:$0xff] %v2794_v34 }
  0x84   : > { %1074 = vmatmul.bf16.gmra.mxu1 %v2756_v16  ;;  %1014 = vmatmul.bf16.gmra.mxu0 %v2758_v17 }
  0x88   : > { %v2796_v37 = vpop.permute.xlu0 %633  ;;  %v2808_v42 = vpop.permute.xlu1 %623 }
  0x89   : > { %3800 = vst [vmem:[#allocation13_spill] sm:$0xff] %v2796_v37 }
  0x8a   : > { %3802 = vst [vmem:[#allocation15_spill] sm:$0xff] %v2808_v42 }
  0x8f   : > { %2155 = vmatmul.msk.bf16.gmra.mxu2 %vm916_vm2, %v2773_v25  ;;  %1293 = vmatmul.bf16.gmra.mxu3 %v2622_v3  ;;  %v2228_v3 = vld [vmem:[%s3748_s1 + $0xd0] sm:$0xf0] }
  0x90   : > { %v2806_v41 = vor.u32 %v2228_v3, %v2050_v38  ;;  %v2813_v44 = vpop.permute.xlu0 %608  ;;  %v2837_v56 = vpop.permute.xlu1 %613  ;;  %v324_v38 = vld [vmem:[%s2383_s29 + $0x1d8] sm:$0xff] }
  0x91   : > { %3803 = vst [vmem:[#allocation16_spill] sm:$0xff] %v2813_v44  ;;  %v2066_v44 = vld [vmem:[%s3748_s1 + $0xf0] sm:$0xf] }
  0x92   : > { %3801 = vst [vmem:[#allocation14_spill] sm:$0xff] %v2806_v41 }
  0x93   : > { %3805 = vst [vmem:[#allocation18_spill] sm:$0xff] %v2837_v56  ;;  %v2214_v56 = vld [vmem:[%s3748_s1 + $0x64] sm:$0xf] }
  0x94   : > { %1087 = vmatmul.bf16.vlgmr.msrb.gmra.mxu1 %v2790_v32  ;;  %1019 = vmatmul.bf16.gmra.mxu0 %v2792_v33 }
  0x98   : > { %v2839_v57 = vpop.permute.xlu0 %543  ;;  %v2869_v2 = vpop.permute.xlu1 %598 }
  0x99   : > { %3806 = vst [vmem:[#allocation19_spill] sm:$0xff] %v2839_v57 }
  0x9a   : > { %3810 = vst [vmem:[#allocation23_spill] sm:$0xff] %v2869_v2  ;;  %v330_v2 = vld [vmem:[%s2383_s29 + $0x208] sm:$0xff] }
  0x9f   : > { %2156 = vmatmul.msk.bf16.gmra.mxu2 %vm916_vm2, %v2806_v41  ;;  %1298 = vmatmul.bf16.gmra.mxu3 %v2683_v40  ;;  %v2062_v40 = vld [vmem:[%s3748_s1 + $0xe0] sm:$0xf] }
  0xa0   : > { %v2853_v63 = vor.u32 %v2231_v59, %v2062_v40  ;;  %v2878_v36 = vpop.permute.xlu0 %528  ;;  %v2074_v40 = vld [vmem:[%s3748_s1 + $0xf8] sm:$0xf]  ;;  %v2234_v59 = vld [vmem:[%s3748_s1 + $0x100] sm:$0xf0]  ;;  %v2902_v4 = vpop.permute.xlu1 %533 }
  0xa1   : > { %v2912_v14 = vor.u32 %v2234_v59, %v2074_v40  ;;  %v2230_v40 = vld [vmem:[%s3748_s1 + $0xe0] sm:$0xf0]  ;;  %v2930_v59 = vpop.permute.xlu2 %538 }
  0xa2   : > { %v2831_v53 = vpop.f32.mrf.mxu2  ;;  %v2833_v54 = vpop.f32.mrf.mxu3  ;;  %3809 = vst [vmem:[#allocation22_spill] sm:$0xff] %v2853_v63 }
  0xa3   : > { %3804 = vst [vmem:[#allocation17_spill] sm:$0xff] %v2833_v54 }
  0xa4   : > { %1092 = vmatmul.bf16.gmra.mxu1 %v2827_v48  ;;  %1024 = vmatmul.bf16.gmra.mxu0 %v2829_v49  ;;  %3816 = vst [vmem:[#allocation29_spill] sm:$0xff] %v2912_v14 }
  0xa5   : > { %3818 = vst [vmem:[#allocation31_spill] sm:$0xff] %v2930_v59 }
  0xa9   : > { %v2965_v34 = vpop.permute.xlu2 %603 }
  0xaa   : > { %v2847_v60 = vpop.f32.mrf.mxu2  ;;  %v2849_v61 = vpop.f32.mrf.mxu3  ;;  %3822 = vst [vmem:[#allocation35_spill] sm:$0xff] %v2965_v34 }
  0xab   : > { %3807 = vst [vmem:[#allocation20_spill] sm:$0xff] %v2849_v61 }
  0xaf   : > { %2157 = vmatmul.msk.bf16.gmra.mxu2 %vm916_vm2, %v2853_v63  ;;  %1303 = vmatmul.bf16.gmra.mxu3 %v2729_v9  ;;  %v322_v9 = vld [vmem:[%s2383_s29 + $0x1c8] sm:$0xff] }
  0xb0   : > { %v364_v3 = vpack.c.bf16 %v324_v38, %v322_v9  ;;  %v316_v9 = vld [vmem:[%s2383_s29 + $0x198] sm:$0xff] }
  0xb1   : > { %v2880_v26 = vpop.f32.mrf.mxu1  ;;  %v2884_v29 = vpop.f32.mrf.mxu0  ;;  %v360_v38 = vpack.c.bf16 %v316_v9, %v314_v15  ;;  %v310_v15 = vld [vmem:[%s2383_s29 + $0x168] sm:$0xff]  ;;  %v312_v9 = vld [vmem:[%s2383_s29 + $0x178] sm:$0xff] }
  0xb2   : > { %3811 = vst [vmem:[#allocation24_spill] sm:$0xff] %v2880_v26  ;;  %v2882_v28 = vpop.f32.mrf.mxu2  ;;  %v2886_v31 = vpop.f32.mrf.mxu3  ;;  %1374 = vmatpush.bf16.msrb.mxu2 %v364_v3  ;;  %v358_v37 = vpack.c.bf16 %v312_v9, %v310_v15  ;;  %v2086_v9 = vld [vmem:[%s3748_s1 + $0x110] sm:$0xf] }
  0xb3   : > { %3812 = vst [vmem:[#allocation25_spill] sm:$0xff] %v2886_v31  ;;  %v2916_v3 = vpop.permute.xlu0 %593  ;;  %v2953_v15 = vpop.permute.xlu1 %518 }
  0xb4   : > { %1097 = vmatmul.bf16.gmra.mxu1 %v2874_v20  ;;  %1029 = vmatmul.bf16.gmra.mxu0 %v2876_v21  ;;  %3817 = vst [vmem:[#allocation30_spill] sm:$0xff] %v2916_v3  ;;  %v3014_v3 = vpop.permute.xlu2 %588 }
  0xb5   : > { %3829 = vst [vmem:[#allocation42_spill] sm:$0xff] %v3014_v3 }
  0xb6   : > { %1375 = vmatpush.bf16.msrb.mxu2 %v362_v47  ;;  %v2054_v47 = vld [vmem:[%s3748_s1 + $0xd8] sm:$0xf] }
  0xb7   : > { %v2939_v24 = vor.u32 %v2230_v40, %v2054_v47  ;;  %v304_v47 = vld [vmem:[%s2383_s29 + $0x138] sm:$0xff] }
  0xb9   : > { %v2904_v5 = vpop.f32.mrf.mxu1  ;;  %v2908_v10 = vpop.f32.mrf.mxu0 }
  0xba   : > { %3814 = vst [vmem:[#allocation27_spill] sm:$0xff] %v2904_v5  ;;  %v2906_v6 = vpop.f32.mrf.mxu2  ;;  %v2910_v13 = vpop.f32.mrf.mxu3  ;;  %1376 = vmatpush.bf16.msrb.mxu2 %v360_v38 }
  0xbb   : > { %3815 = vst [vmem:[#allocation28_spill] sm:$0xff] %v2910_v13  ;;  %v2957_v40 = vpop.permute.xlu0 %578 }
  0xbc   : > { %3821 = vst [vmem:[#allocation34_spill] sm:$0xff] %v2957_v40 }
  0xbe   : > { %1377 = vmatpush.bf16.msrb.mxu2 %v358_v37  ;;  %v354_v37 = vpack.c.bf16 %v304_v47, %v302_v46  ;;  %v298_v46 = vld [vmem:[%s2383_s29 + $0x108] sm:$0xff]  ;;  %v300_v47 = vld [vmem:[%s2383_s29 + $0x118] sm:$0xff] }
  0xbf   : > { %2158 = vmatmul.msk.bf16.gmra.mxu2 %vm916_vm2, %v2912_v14  ;;  %1308 = vmatmul.bf16.gmra.mxu3 %v2758_v17  ;;  %v308_v17 = vld [vmem:[%s2383_s29 + $0x158] sm:$0xff]  ;;  %v352_v19 = vpack.c.bf16 %v300_v47, %v298_v46 }
  0xc0   : > { %v356_v45 = vpack.c.bf16 %v308_v17, %v306_v51 }
  0xc1   : > { %v2941_v13 = vpop.f32.mrf.mxu1  ;;  %v2945_v38 = vpop.f32.mrf.mxu0 }
  0xc2   : > { %3819 = vst [vmem:[#allocation32_spill] sm:$0xff] %v2941_v13  ;;  %v2943_v31 = vpop.f32.mrf.mxu2  ;;  %v2947_v42 = vpop.f32.mrf.mxu3  ;;  %1378 = vmatpush.bf16.msrb.mxu2 %v356_v45  ;;  %v334_v13 = vld [vmem:[%s2383_s29 + $0x228] sm:$0x7f] }
  0xc3   : > { %3820 = vst [vmem:[#allocation33_spill] sm:$0xff] %v2947_v42  ;;  %v2237_v42 = vld [vmem:[%s3748_s1 + $0x118] sm:$0xf0]  ;;  %v2998_v47 = vpop.permute.xlu0 %513 }
  0xc4   : > { %1102 = vmatmul.bf16.gmra.mxu1 %v2937_v23  ;;  %1034 = vmatmul.bf16.gmra.mxu0 %v2939_v24  ;;  %v2975_v45 = vor.u32 %v2237_v42, %v2086_v9  ;;  %v2233_v42 = vld [vmem:[%s3748_s1 + $0xf8] sm:$0xf0]  ;;  %v2994_v9 = vpop.permute.xlu1 %583 }
  0xc5   : > { %3826 = vst [vmem:[#allocation39_spill] sm:$0xff] %v2994_v9  ;;  %v3002_v5 = vor.u32 %v2233_v42, %v2066_v44  ;;  %v2098_v44 = vld [vmem:[%s3748_s1 + $0x128] sm:$0xf] }
  0xc6   : > { %3825 = vst [vmem:[#allocation38_spill] sm:$0xff] %v2975_v45  ;;  %1379 = vmatpush.bf16.msrb.mxu2 %v354_v37  ;;  %v370_v37 = vpack.c.bf16 %v334_v13, %v334_v13 }
  0xc8   : > { %v979_v46 = vand.u32 %v2388_v8, %v370_v37  ;;  %v2217_v8 = vld [vmem:[%s3748_s1 + $0x7c] sm:$0xf] }
  0xc9   : > { %v2967_v61 = vpop.f32.mrf.mxu1  ;;  %v2971_v17 = vpop.f32.mrf.mxu0 }
  0xca   : > { %3823 = vst [vmem:[#allocation36_spill] sm:$0xff] %v2967_v61  ;;  %v2969_v51 = vpop.f32.mrf.mxu2  ;;  %v2973_v54 = vpop.f32.mrf.mxu3  ;;  %v1996_v61 = vld [vmem:[%s3748_s1 + $0x6c] sm:$0xf0]  ;;  %1380 = vmatpush.bf16.msrb.mxu2 %v352_v19  ;;  %1477 = vmatpush.bf16.msrb.mxu0 %v979_v46 }
  0xcb   : > { %3824 = vst [vmem:[#allocation37_spill] sm:$0xff] %v2973_v54  ;;  %v3000_v54 = vor.u32 %v2214_v56, %v1996_v61  ;;  %v2240_v56 = vld [vmem:[%s3748_s1 + $0x130] sm:$0xf0] }
  0xcc   : > { %v3024_v61 = vpop.permute.xlu1 %568 }
  0xcd   : > { %3830 = vst [vmem:[#allocation43_spill] sm:$0xff] %v3024_v61 }
  0xcf   : > { %2159 = vmatmul.msk.bf16.gmra.mxu2 %vm916_vm2, %v2975_v45  ;;  %1313 = vmatmul.bf16.gmra.mxu3 %v2792_v33  ;;  %v332_v33 = vld [vmem:[%s2383_s29 + $0x218] sm:$0xff] }
  0xd0   : > { %v368_v19 = vpack.c.bf16 %v332_v33, %v330_v2  ;;  %v3034_v33 = vor.u32 %v2240_v56, %v2098_v44  ;;  %v3050_v44 = vpop.permute.xlu2 %523 }
  0xd1   : > { %v3004_v34 = vpop.f32.mrf.mxu1  ;;  %v3008_v13 = vpop.f32.mrf.mxu0 }
  0xd2   : > { %3827 = vst [vmem:[#allocation40_spill] sm:$0xff] %v3004_v34  ;;  %v3006_v55 = vpop.f32.mrf.mxu2  ;;  %v3010_v26 = vpop.f32.mrf.mxu3  ;;  %1478 = vmatpush.bf16.msrb.mxu0 %v368_v19 }
  0xd3   : > { %3828 = vst [vmem:[#allocation41_spill] sm:$0xff] %v3010_v26  ;;  %v3036_v19 = vpop.permute.xlu0 %498  ;;  %v2008_v26 = vld [vmem:[%s3748_s1 + $0x84] sm:$0xf0] }
  0xd4   : > { %1107 = vmatmul.bf16.gmra.mxu1 %v3000_v54  ;;  %1039 = vmatmul.bf16.gmra.mxu0 %v3002_v5  ;;  %3833 = vst [vmem:[#allocation46_spill] sm:$0xff] %v3034_v33  ;;  %v3055_v56 = vor.u32 %v2217_v8, %v2008_v26  ;;  %v3067_v45 = vpop.permute.xlu1 %503 }
  0xd8   : > { %v3073_v8 = vpop.permute.xlu2 %508 }
  0xd9   : > { %v3026_v42 = vpop.f32.mrf.mxu1  ;;  %v3030_v37 = vpop.f32.mrf.mxu0 }
  0xda   : > { %3831 = vst [vmem:[#allocation44_spill] sm:$0xff] %v3026_v42  ;;  %v3028_v2 = vpop.f32.mrf.mxu2  ;;  %v3032_v46 = vpop.f32.mrf.mxu3  ;;  %v2078_v42 = vld [vmem:[%s3748_s1 + $0x108] sm:$0xf] }
  0xdb   : > { %3832 = vst [vmem:[#allocation45_spill] sm:$0xff] %v3032_v46  ;;  %v2236_v46 = vld [vmem:[%s3748_s1 + $0x110] sm:$0xf0] }
  0xdc   : > { %v3057_v34 = vor.u32 %v2236_v46, %v2078_v42  ;;  %v3087_v61 = vpop.permute.xlu1 %488 }
  0xdf   : > { %2160 = vmatmul.msk.bf16.gmra.mxu2 %vm916_vm2, %v3034_v33  ;;  %1318 = vmatmul.bf16.gmra.mxu3 %v2829_v49  ;;  %v3071_v33 = vpop.permute.xlu0 %563 }
  0xe0   : > { %3836 = vst [vmem:[#allocation49_spill] sm:$0xff] %v3071_v33  ;;  %v3101_v62 = vpop.permute.xlu2 %573 }
  0xe1   : > { %v3059_v30 = vpop.f32.mrf.mxu1  ;;  %v3063_v9 = vpop.f32.mrf.mxu0  ;;  %3840 = vst [vmem:[#allocation53_spill] sm:$0xff] %v3101_v62  ;;  %v2032_v62 = vld [vmem:[%s3748_s1 + $0xb4] sm:$0xf0] }
  0xe2   : > { %3834 = vst [vmem:[#allocation47_spill] sm:$0xff] %v3059_v30  ;;  %v3061_v3 = vpop.f32.mrf.mxu2  ;;  %v3065_v40 = vpop.f32.mrf.mxu3  ;;  %v2020_v30 = vld [vmem:[%s3748_s1 + $0x9c] sm:$0xf0] }
  0xe3   : > { %3835 = vst [vmem:[#allocation48_spill] sm:$0xff] %v3065_v40  ;;  %v2220_v40 = vld [vmem:[%s3748_s1 + $0x94] sm:$0xf] }
  0xe4   : > { %1112 = vmatmul.bf16.gmra.mxu1 %v3055_v56  ;;  %1044 = vmatmul.bf16.gmra.mxu0 %v3057_v34  ;;  %v3091_v11 = vor.u32 %v2220_v40, %v2020_v30 }
  0xe8   : > { %v3120_v57 = vpop.permute.xlu2 %558 }
  0xe9   : > { %v3075_v49 = vpop.f32.mrf.mxu1  ;;  %v3079_v42 = vpop.f32.mrf.mxu0  ;;  %3843 = vst [vmem:[#allocation56_spill] sm:$0xff] %v3120_v57 }
  0xea   : > { %3837 = vst [vmem:[#allocation50_spill] sm:$0xff] %v3075_v49  ;;  %v3077_v26 = vpop.f32.mrf.mxu2  ;;  %v1273_v46 = vpop.f32.mrf.mxu3 }
  0xeb   : > { %v479_v49 = vpop.permute.xlu0 %478 }
  0xef   : > { %1381 = vmatmul.bf16.vlgmr.msrb.gmra.mxu2 %v2790_v32  ;;  %1323 = vmatmul.bf16.gmra.mxu3 %v2876_v21  ;;  %v484_v32 = vpop.permute.xlu1 %483 }
  0xf1   : > { %v3093_v33 = vpop.f32.mrf.mxu1  ;;  %v3097_v14 = vpop.f32.mrf.mxu0 }
  0xf2   : > { %3838 = vst [vmem:[#allocation51_spill] sm:$0xff] %v3093_v33  ;;  %v3095_v46 = vpop.f32.mrf.mxu2  ;;  %v1284_v43 = vpop.f32.mrf.mxu3 }
  0xf3   : > { %v3099_v63 = vadd.f32 %v1284_v43, %v479_v49  ;;  %v2223_v43 = vld [vmem:[%s3748_s1 + $0xac] sm:$0xf] }
  0xf4   : > { %1117 = vmatmul.bf16.gmra.mxu1 %v3091_v11  ;;  %2166 = vmatmul.msk.bf16.vlgmr.msrb.gmra.mxu0 %vm916_vm2, %v2415_v27  ;;  %v3124_v27 = vor.u32 %v2223_v43, %v2032_v62 }
  0xf5   : > { %3839 = vst [vmem:[#allocation52_spill] sm:$0xff] %v3099_v63 }
  0xf9   : > { %v3106_v21 = vpop.f32.mrf.mxu1  ;;  %v3110_v40 = vpop.f32.mrf.mxu0 }
  0xfa   : > { %3841 = vst [vmem:[#allocation54_spill] sm:$0xff] %v3106_v21  ;;  %v3108_v30 = vpop.f32.mrf.mxu2  ;;  %v1286_v33 = vpop.f32.mrf.mxu3 }
  0xfb   : > { %v3112_v16 = vadd.f32 %v1286_v33, %v484_v32 }
  0xfd   : > { %3842 = vst [vmem:[#allocation55_spill] sm:$0xff] %v3112_v16 }
  0xff   : > { %1386 = vmatmul.bf16.gmra.mxu2 %v2827_v48  ;;  %1328 = vmatmul.bf16.gmra.mxu3 %v2939_v24  ;;  %v494_v48 = vpop.permute.xlu2 %493 }
 0x101   : > { %v3126_v21 = vpop.f32.mrf.mxu1  ;;  %v3130_v16 = vpop.f32.mrf.mxu0 }
 0x102   : > { %3844 = vst [vmem:[#allocation57_spill] sm:$0xff] %v3126_v21  ;;  %v3128_v33 = vpop.f32.mrf.mxu2  ;;  %v1289_v41 = vpop.f32.mrf.mxu3 }
 0x103   : > { %3845 = vst [vmem:[#allocation58_spill] sm:$0xff] %v3128_v33  ;;  %v3133_v59 = vadd.f32 %v1289_v41, %v3087_v61  ;;  %v2226_v33 = vld [vmem:[%s3748_s1 + $0xc4] sm:$0xf]  ;;  %v2044_v41 = vld [vmem:[%s3748_s1 + $0xcc] sm:$0xf0] }
 0x104   : > { %1122 = vmatmul.bf16.gmra.mxu1 %v3124_v27  ;;  %2167 = vmatmul.msk.bf16.gmra.mxu0 %vm916_vm2, %v2464_v52  ;;  %v991_v52 = vadd.f32 %v2884_v29, %v479_v49 }
 0x105   : > { %3846 = vst [vmem:[#allocation59_spill] sm:$0xff] %v3133_v59 }
 0x109   : > { %v1077_v57 = vpop.f32.mrf.mxu1  ;;  %v3140_v62 = vpop.f32.mrf.mxu0 }
 0x10a   : > { %v3138_v24 = vpop.f32.mrf.mxu2  ;;  %v1291_v43 = vpop.f32.mrf.mxu3  ;;  %v3153_v57 = vor.u32 %v2226_v33, %v2044_v41 }
 0x10b   : > { %3847 = vst [vmem:[#allocation60_spill] sm:$0xff] %v3138_v24  ;;  %v3142_v21 = vadd.f32 %v1291_v43, %v494_v48 }
 0x10d   : > { %3848 = vst [vmem:[#allocation61_spill] sm:$0xff] %v3142_v21 }
 0x10f   : > { %1391 = vmatmul.bf16.gmra.mxu2 %v2874_v20  ;;  %1333 = vmatmul.bf16.gmra.mxu3 %v3002_v5  ;;  %v993_v20 = vadd.f32 %v2908_v10, %v484_v32 }
 0x111   : > { %v1088_v59 = vpop.f32.mrf.mxu1  ;;  %v3157_v21 = vpop.f32.mrf.mxu0 }
 0x112   : > { %v3155_v24 = vpop.f32.mrf.mxu2  ;;  %v1089_v43 = vadd.f32 %v1088_v59, %v991_v52  ;;  %v3159_v63 = vpop.f32.mrf.mxu3  ;;  %v2229_v52 = vld [vmem:[%s3748_s1 + $0xdc] sm:$0xf] }
 0x113   : > { %3849 = vst [vmem:[#allocation62_spill] sm:$0xff] %v3159_v63 }
 0x114   : > { %1127 = vmatmul.bf16.gmra.mxu1 %v3153_v57  ;;  %2168 = vmatmul.msk.bf16.gmra.mxu0 %vm916_vm2, %v2525_v18  ;;  %v1187_v29 = vadd.f32 %v2831_v53, %v1089_v43  ;;  %v2056_v18 = vld [vmem:[%s3748_s1 + $0xe4] sm:$0xf0]  ;;  %v996_v53 = vadd.f32 %v2945_v38, %v3087_v61 }
 0x115   : > { %v3183_v43 = vor.u32 %v2229_v52, %v2056_v18 }
 0x116   : > { %v1569_v10 = vmax.f32 %v1187_v29, 0.0 }
 0x119   : > { %v1090_v5 = vpop.f32.mrf.mxu1  ;;  %v3168_v33 = vpop.f32.mrf.mxu0 }
 0x11a   : > { %v3165_v7 = vpop.f32.mrf.mxu2  ;;  %v1091_v49 = vadd.f32 %v1090_v5, %v993_v20  ;;  %v3170_v59 = vpop.f32.mrf.mxu3 }
 0x11b   : > { %3850 = vst [vmem:[#allocation63_spill] sm:$0xff] %v3170_v59 }
 0x11c   : > { %v1189_v41 = vadd.f32 %v2847_v60, %v1091_v49 }
 0x11e   : > { %v1571_v32 = vmax.f32 %v1189_v41, 0.0 }
 0x11f   : > { %1396 = vmatmul.bf16.gmra.mxu2 %v2937_v23  ;;  %1338 = vmatmul.bf16.gmra.mxu3 %v3057_v34  ;;  %v998_v23 = vadd.f32 %v2971_v17, %v494_v48 }
 0x120   : > { %v3185_v60 = vpack.c.bf16 %v1571_v32, %v1569_v10  ;;  %v2232_v10 = vld [vmem:[%s3748_s1 + $0xf4] sm:$0xf] }
 0x121   : > { %v1093_v20 = vpop.f32.mrf.mxu1  ;;  %v3189_v59 = vpop.f32.mrf.mxu0 }
 0x122   : > { %v3187_v5 = vpop.f32.mrf.mxu2  ;;  %v1094_v49 = vadd.f32 %v1093_v20, %v996_v53  ;;  %v3191_v63 = vpop.f32.mrf.mxu3 }
 0x124   : > { %1132 = vmatmul.bf16.gmra.mxu1 %v3183_v43  ;;  %2169 = vmatmul.msk.bf16.gmra.mxu0 %vm916_vm2, %v2589_v50  ;;  %v1192_v61 = vadd.f32 %v2882_v28, %v1094_v49  ;;  %v2068_v50 = vld [vmem:[%s3748_s1 + $0xfc] sm:$0xf0]  ;;  %v1001_v28 = vadd.f32 %v3008_v13, %v3036_v19 }
 0x125   : > { %v3215_v32 = vor.u32 %v2232_v10, %v2068_v50 }
 0x126   : > { %v1573_v17 = vmax.f32 %v1192_v61, 0.0 }
 0x129   : > { %v1095_v34 = vpop.f32.mrf.mxu1  ;;  %v3200_v41 = vpop.f32.mrf.mxu0 }
 0x12a   : > { %v3197_v38 = vpop.f32.mrf.mxu2  ;;  %v1096_v29 = vadd.f32 %v1095_v34, %v998_v23  ;;  %v3202_v52 = vpop.f32.mrf.mxu3 }
 0x12c   : > { %v1194_v18 = vadd.f32 %v2906_v6, %v1096_v29 }
 0x12e   : > { %v1575_v48 = vmax.f32 %v1194_v18, 0.0 }
 0x12f   : > { %1401 = vmatmul.bf16.gmra.mxu2 %v3000_v54  ;;  %1343 = vmatmul.bf16.gmra.mxu3 %v2494_v1  ;;  %v1003_v1 = vadd.f32 %v3030_v37, %v3067_v45 }
 0x130   : > { %v3217_v6 = vpack.c.bf16 %v1575_v48, %v1573_v17  ;;  %v2235_v17 = vld [vmem:[%s3748_s1 + $0x10c] sm:$0xf] }
 0x131   : > { %v1098_v53 = vpop.f32.mrf.mxu1  ;;  %v3221_v23 = vpop.f32.mrf.mxu0 }
 0x132   : > { %v3219_v20 = vpop.f32.mrf.mxu2  ;;  %v1099_v49 = vadd.f32 %v1098_v53, %v1001_v28  ;;  %v3223_v34 = vpop.f32.mrf.mxu3 }
 0x134   : > { %1137 = vmatmul.bf16.gmra.mxu1 %v3215_v32  ;;  %2170 = vmatmul.msk.bf16.gmra.mxu0 %vm916_vm2, %v2650_v22  ;;  %v1197_v61 = vadd.f32 %v2943_v31, %v1099_v49  ;;  %v2080_v22 = vld [vmem:[%s3748_s1 + $0x114] sm:$0xf0]  ;;  %v1006_v31 = vadd.f32 %v3063_v9, %v3073_v8 }
 0x135   : > { %v3248_v28 = vor.u32 %v2235_v17, %v2080_v22 }
 0x136   : > { %v1577_v37 = vmax.f32 %v1197_v61, 0.0 }
 0x139   : > { %v1100_v54 = vpop.f32.mrf.mxu1  ;;  %v3233_v18 = vpop.f32.mrf.mxu0 }
 0x13a   : > { %v3230_v13 = vpop.f32.mrf.mxu2  ;;  %v1101_v29 = vadd.f32 %v1100_v54, %v1003_v1  ;;  %v3235_v10 = vpop.f32.mrf.mxu3 }
 0x13c   : > { %v1199_v50 = vadd.f32 %v2969_v51, %v1101_v29 }
 0x13e   : > { %v1579_v48 = vmax.f32 %v1199_v50, 0.0 }
 0x13f   : > { %1406 = vmatmul.bf16.gmra.mxu2 %v3055_v56  ;;  %1348 = vmatmul.bf16.gmra.mxu3 %v2558_v35  ;;  %v1008_v35 = vadd.f32 %v3079_v42, %v2998_v47 }
 0x140   : > { %v3250_v51 = vpack.c.bf16 %v1579_v48, %v1577_v37  ;;  %v2238_v48 = vld [vmem:[%s3748_s1 + $0x124] sm:$0xf] }
 0x141   : > { %v1103_v53 = vpop.f32.mrf.mxu1  ;;  %v3254_v54 = vpop.f32.mrf.mxu0 }
 0x142   : > { %v3252_v49 = vpop.f32.mrf.mxu2  ;;  %v1104_v1 = vadd.f32 %v1103_v53, %v1006_v31  ;;  %v3256_v29 = vpop.f32.mrf.mxu3 }
 0x144   : > { %1142 = vmatmul.bf16.gmra.mxu1 %v3248_v28  ;;  %2171 = vmatmul.msk.bf16.gmra.mxu0 %vm916_vm2, %v2708_v58  ;;  %v1202_v61 = vadd.f32 %v3006_v55, %v1104_v1  ;;  %v2092_v58 = vld [vmem:[%s3748_s1 + $0x12c] sm:$0xf0]  ;;  %v1011_v55 = vadd.f32 %v3097_v14, %v2953_v15 }
 0x145   : > { %v3281_v53 = vor.u32 %v2238_v48, %v2092_v58 }
 0x146   : > { %v1581_v42 = vmax.f32 %v1202_v61, 0.0 }
 0x149   : > { %v1105_v9 = vpop.f32.mrf.mxu1  ;;  %v3266_v17 = vpop.f32.mrf.mxu0 }
 0x14a   : > { %v3263_v56 = vpop.f32.mrf.mxu2  ;;  %v1106_v50 = vadd.f32 %v1105_v9, %v1008_v35  ;;  %v3268_v22 = vpop.f32.mrf.mxu3 }
 0x14b   : > { %3851 = vst [vmem:[#allocation64_spill] sm:$0xff] %v3268_v22 }
 0x14c   : > { %v1204_v37 = vadd.f32 %v3028_v2, %v1106_v50 }
 0x14e   : > { %v1583_v31 = vmax.f32 %v1204_v37, 0.0 }
 0x14f   : > { %1411 = vmatmul.bf16.gmra.mxu2 %v3091_v11  ;;  %1353 = vmatmul.bf16.gmra.mxu3 %v2620_v0  ;;  %v1013_v0 = vadd.f32 %v3110_v40, %v3050_v44 }
 0x150   : > { %v3283_v2 = vpack.c.bf16 %v1583_v31, %v1581_v42  ;;  %v2241_v31 = vld [vmem:[%s3748_s1 + $0x13c] sm:$0xf] }
 0x151   : > { %v1108_v1 = vpop.f32.mrf.mxu1  ;;  %v3287_v50 = vpop.f32.mrf.mxu0 }
 0x152   : > { %v3285_v35 = vpop.f32.mrf.mxu2  ;;  %v1109_v9 = vadd.f32 %v1108_v1, %v1011_v55  ;;  %v3289_v22 = vpop.f32.mrf.mxu3 }
 0x153   : > { %3852 = vst [vmem:[#allocation65_spill] sm:$0xff] %v3285_v35 }
 0x154   : > { %3853 = vst [vmem:[#allocation66_spill] sm:$0xff] %v3289_v22  ;;  %1147 = vmatmul.bf16.gmra.mxu1 %v3281_v53  ;;  %2172 = vmatmul.msk.bf16.gmra.mxu0 %vm916_vm2, %v2744_v12  ;;  %v1207_v61 = vadd.f32 %v3061_v3, %v1109_v9  ;;  %v2104_v12 = vld [vmem:[%s3748_s1 + $0x144] sm:$0xf0] }
 0x155   : > { %v3312_v3 = vor.u32 %v2241_v31, %v2104_v12  ;;  %v3863_v22 = vld [vmem:[#allocation31_spill] sm:$0xff] }
 0x156   : > { %v1585_v40 = vmax.f32 %v1207_v61, 0.0 }
 0x159   : > { %v1110_v11 = vpop.f32.mrf.mxu1  ;;  %v3299_v48 = vpop.f32.mrf.mxu0 }
 0x15a   : > { %v3296_v14 = vpop.f32.mrf.mxu2  ;;  %v1111_v37 = vadd.f32 %v1110_v11, %v1013_v0  ;;  %v3301_v58 = vpop.f32.mrf.mxu3 }
 0x15b   : > { %3854 = vst [vmem:[#allocation67_spill] sm:$0xff] %v3296_v14 }
 0x15c   : > { %3855 = vst [vmem:[#allocation68_spill] sm:$0xff] %v3301_v58  ;;  %v1209_v42 = vadd.f32 %v3077_v26, %v1111_v37  ;;  %v1016_v37 = vadd.f32 %v3130_v16, %v2878_v36 }
 0x15e   : > { %v1587_v55 = vmax.f32 %v1209_v42, 0.0 }
 0x15f   : > { %1416 = vmatmul.bf16.gmra.mxu2 %v3124_v27  ;;  %1358 = vmatmul.bf16.gmra.mxu3 %v2681_v39  ;;  %v1018_v27 = vadd.f32 %v3140_v62, %v2902_v4  ;;  %v1683_v62 = vld [vmem:[%s3751_s4 + $0x10] sm:$0x1] }
 0x160   : > { %v3314_v1 = vpack.c.bf16 %v1587_v55, %v1585_v40  ;;  %1696 = vperm.xlu1 %2295, %v1683_v62   ;;  %v3865_v62 = vld [vmem:[#allocation19_spill] sm:$0xff] }
 0x161   : > { %v1113_v9 = vpop.f32.mrf.mxu1  ;;  %v3318_v0 = vpop.f32.mrf.mxu0 }
 0x162   : > { %v3316_v26 = vpop.f32.mrf.mxu2  ;;  %v3320_v11 = vpop.f32.mrf.mxu3  ;;  %v1114_v39 = vadd.f32 %v1113_v9, %v1016_v37  ;;  %v2244_v9 = vld [vmem:[%s3748_s1 + $0x154] sm:$0xf] }
 0x163   : > { %3856 = vst [vmem:[#allocation69_spill] sm:$0xff] %v3316_v26 }
 0x164   : > { %3857 = vst [vmem:[#allocation70_spill] sm:$0xff] %v3320_v11  ;;  %1152 = vmatmul.bf16.gmra.mxu1 %v3312_v3  ;;  %2173 = vmatmul.msk.bf16.gmra.mxu0 %vm916_vm2, %v2773_v25  ;;  %v1212_v31 = vadd.f32 %v3095_v46, %v1114_v39  ;;  %v1682_v25 = vld [vmem:[%s3751_s4 + $0x8] sm:$0xff]  ;;  %v2116_v46 = vld [vmem:[%s3748_s1 + $0x15c] sm:$0xf0]  ;;  %v3860_v39 = vld [vmem:[#allocation8_spill] sm:$0xff] }
 0x165   : > { %1691 = vperm.xlu0 %2294, %v1682_v25   ;;  %v3861_v11 = vld [vmem:[#allocation52_spill] sm:$0xff]  ;;  %v1021_v25 = vadd.f32 %v3157_v21, %v3863_v22 }
 0x166   : > { %v1589_v37 = vmax.f32 %v1212_v31, 0.0  ;;  %v3869_v21 = vld [vmem:[#allocation60_spill] sm:$0xff] }
 0x169   : > { %v1115_v61 = vpop.f32.mrf.mxu1  ;;  %v3332_v40 = vpop.f32.mrf.mxu0 }
 0x16a   : > { %v3329_v42 = vpop.f32.mrf.mxu2  ;;  %v1116_v12 = vadd.f32 %v1115_v61, %v1018_v27  ;;  %v3334_v55 = vpop.f32.mrf.mxu3  ;;  %v3351_v27 = vor.u32 %v2244_v9, %v2116_v46  ;;  %v1023_v9 = vadd.f32 %v3168_v33, %v3865_v62  ;;  %v2128_v33 = vld [vmem:[%s3748_s1 + $0x174] sm:$0xf0] }
 0x16b   : > { %3858 = vst [vmem:[#allocation71_spill] sm:$0xff] %v3329_v42 }
 0x16c   : > { %3859 = vst [vmem:[#allocation72_spill] sm:$0xff] %v3334_v55  ;;  %v1214_v16 = vadd.f32 %v3108_v30, %v1116_v12 }
 0x16e   : > { %v1591_v30 = vmax.f32 %v1214_v16, 0.0 }
 0x16f   : > { %1421 = vmatmul.bf16.gmra.mxu2 %v3153_v57  ;;  %1363 = vmatmul.bf16.gmra.mxu3 %v3860_v39  ;;  %v3864_v57 = vld [vmem:[#allocation14_spill] sm:$0xff]  ;;  %v3867_v39 = vld [vmem:[#allocation55_spill] sm:$0xff] }
 0x170   : > { %v3353_v61 = vpack.c.bf16 %v1591_v30, %v1589_v37  ;;  %v3866_v30 = vld [vmem:[#allocation58_spill] sm:$0xff] }
 0x171   : > { %v1118_v12 = vpop.f32.mrf.mxu1  ;;  %v1480_v26 = vpop.f32.mrf.mxu0 }
 0x172   : > { %v1382_v55 = vpop.f32.mrf.mxu2  ;;  %v3356_v58 = vpop.f32.mrf.mxu3  ;;  %v1119_v16 = vadd.f32 %v1118_v12, %v1021_v25  ;;  %v2247_v12 = vld [vmem:[%s3748_s1 + $0x16c] sm:$0xf] }
 0x173   : > { %v1383_v42 = vadd.f32 %v1382_v55, %v3861_v11  ;;  %3862 = vst [vmem:[#allocation8_spill] sm:$0xff] %v3356_v58 }
 0x174   : > { %1157 = vmatmul.bf16.gmra.mxu1 %v3351_v27  ;;  %2174 = vmatmul.msk.bf16.gmra.mxu0 %vm916_vm2, %v3864_v57  ;;  %v1217_v11 = vadd.f32 %v3866_v30, %v1119_v16 }
 0x175   : > { %v1481_v31 = vadd.f32 %v1480_v26, %v1383_v42 }
 0x176   : > { %v1593_v25 = vmax.f32 %v1217_v11, 0.0  ;;  %v3873_v11 = vld [vmem:[#allocation21_spill] sm:$0xff] }
 0x177   : > { %v1570_v57 = vmax.f32 %v1481_v31, 0.0  ;;  %v1026_v31 = vadd.f32 %v3189_v59, %v3873_v11 }
 0x179   : > { %v1120_v46 = vpop.f32.mrf.mxu1  ;;  %v1482_v14 = vpop.f32.mrf.mxu0 }
 0x17a   : > { %v1384_v37 = vpop.f32.mrf.mxu2  ;;  %v1121_v55 = vadd.f32 %v1120_v46, %v1023_v9  ;;  %v3367_v35 = vpop.f32.mrf.mxu3  ;;  %v3870_v46 = vld [vmem:[#allocation10_spill] sm:$0xff] }
 0x17b   : > { %v1385_v58 = vadd.f32 %v1384_v37, %v3867_v39  ;;  %3868 = vst [vmem:[#allocation52_spill] sm:$0xff] %v3367_v35  ;;  %v3378_v37 = vor.u32 %v2247_v12, %v2128_v33  ;;  %v3872_v39 = vld [vmem:[#allocation59_spill] sm:$0xff]  ;;  %v3875_v12 = vld [vmem:[#allocation26_spill] sm:$0xff] }
 0x17c   : > { %v1219_v26 = vadd.f32 %v3869_v21, %v1121_v55  ;;  %v1028_v33 = vadd.f32 %v3200_v41, %v3875_v12  ;;  %v3877_v41 = vld [vmem:[#allocation62_spill] sm:$0xff] }
 0x17d   : > { %v1483_v42 = vadd.f32 %v1482_v14, %v1385_v58 }
 0x17e   : > { %v1595_v16 = vmax.f32 %v1219_v26, 0.0 }
 0x17f   : > { %v1572_v9 = vmax.f32 %v1483_v42, 0.0  ;;  %1426 = vmatmul.bf16.gmra.mxu2 %v3183_v43  ;;  %1368 = vmatmul.bf16.gmra.mxu3 %v3870_v46  ;;  %v3874_v43 = vld [vmem:[#allocation22_spill] sm:$0xff] }
 0x180   : > { %v1657_v30 = vpack.c.bf16 %v1595_v16, %v1593_v25  ;;  %v1681_v25 = vld [vmem:[%s3751_s4] sm:$0xff] }
 0x181   : > { %v3380_v14 = vpack.c.bf16 %v1572_v9, %v1570_v57  ;;  %v1123_v58 = vpop.f32.mrf.mxu1  ;;  %v1485_v35 = vpop.f32.mrf.mxu0  ;;  %1686 = vperm.xlu2 %2296, %v1681_v25  }
 0x182   : > { %v1387_v55 = vpop.f32.mrf.mxu2  ;;  %v3383_v62 = vpop.f32.mrf.mxu3  ;;  %v1124_v42 = vadd.f32 %v1123_v58, %v1026_v31  ;;  %v1295_v31 = vadd.f32 %v3877_v41, %v3036_v19 }
 0x183   : > { %3871 = vst [vmem:[#allocation31_spill] sm:$0xff] %v3380_v14  ;;  %v1388_v21 = vadd.f32 %v1387_v55, %v3872_v39 }
 0x184   : > { %1162 = vmatmul.bf16.gmra.mxu1 %v3378_v37  ;;  %2175 = vmatmul.msk.bf16.gmra.mxu0 %vm916_vm2, %v3874_v43  ;;  %v1222_v9 = vadd.f32 %v3155_v24, %v1124_v42  ;;  %v2250_v43 = vld [vmem:[%s3748_s1 + $0x184] sm:$0xf]  ;;  %v2140_v24 = vld [vmem:[%s3748_s1 + $0x18c] sm:$0xf0] }
 0x185   : > { %v1486_v26 = vadd.f32 %v1485_v35, %v1388_v21  ;;  %v3876_v35 = vld [vmem:[#allocation61_spill] sm:$0xff] }
 0x186   : > { %v1597_v42 = vmax.f32 %v1222_v9, 0.0 }
 0x189   : > { %v1125_v57 = vpop.f32.mrf.mxu1  ;;  %v1487_v55 = vpop.f32.mrf.mxu0 }
 0x18a   : > { %v1389_v16 = vpop.f32.mrf.mxu2  ;;  %v1126_v59 = vadd.f32 %v1125_v57, %v1028_v33  ;;  %v3397_v39 = vpop.f32.mrf.mxu3  ;;  %v1574_v33 = vmax.f32 %v1486_v26, 0.0 }
 0x18b   : > { %v1390_v46 = vadd.f32 %v1389_v16, %v3876_v35  ;;  %v3878_v16 = vld [vmem:[#allocation56_spill] sm:$0xff]  ;;  %v3411_v35 = vor.u32 %v2250_v43, %v2140_v24 }
 0x18c   : > { %v1224_v58 = vadd.f32 %v3165_v7, %v1126_v59  ;;  %v1031_v7 = vadd.f32 %v3221_v23, %v3878_v16  ;;  %v3880_v23 = vld [vmem:[#allocation63_spill] sm:$0xff] }
 0x18d   : > { %v1488_v21 = vadd.f32 %v1487_v55, %v1390_v46 }
 0x18e   : > { %v1599_v25 = vmax.f32 %v1224_v58, 0.0  ;;  %v1297_v58 = vadd.f32 %v3880_v23, %v3067_v45  ;;  %v1300_v45 = vadd.f32 %v3191_v63, %v3073_v8 }
 0x18f   : > { %v1576_v57 = vmax.f32 %v1488_v21, 0.0  ;;  %1431 = vmatmul.bf16.gmra.mxu2 %v3215_v32  ;;  %v3879_v32 = vld [vmem:[#allocation29_spill] sm:$0xff] }
 0x190   : > { %v1659_v59 = vpack.c.bf16 %v1599_v25, %v1597_v42  ;;  %v3881_v21 = vld [vmem:[#allocation49_spill] sm:$0xff] }
 0x191   : > { %v3413_v19 = vpack.c.bf16 %v1576_v57, %v1574_v33  ;;  %v1128_v46 = vpop.f32.mrf.mxu1  ;;  %v1490_v12 = vpop.f32.mrf.mxu0  ;;  %v1033_v43 = vadd.f32 %v3233_v18, %v3881_v21  ;;  %v3882_v57 = vld [vmem:[#allocation9_spill] sm:$0xff] }
 0x192   : > { %v1392_v55 = vpop.f32.mrf.mxu2  ;;  %v1129_v41 = vadd.f32 %v1128_v46, %v1031_v7  ;;  %1736 = vmatpush.bf16.msra.mxu1 %v1659_v59  ;;  %v3415_v9 = vpop.f32.mrf.mxu3  ;;  %v824_v7 = vunpack.c.h.b16 %v3882_v57 }
 0x193   : > { %v1393_v14 = vadd.f32 %v1392_v55, %v1295_v31 }
 0x194   : > { %1167 = vmatmul.bf16.gmra.mxu1 %v3411_v35  ;;  %2176 = vmatmul.msk.bf16.gmra.mxu0 %vm916_vm2, %v3879_v32  ;;  %v1227_v31 = vadd.f32 %v3187_v5, %v1129_v41  ;;  %v3883_v5 = vld [vmem:[#allocation43_spill] sm:$0xff]  ;;  %v3436_v41 = vpack.c.b16 %v824_v7, %v824_v7 }
 0x195   : > { %v1491_v26 = vadd.f32 %v1490_v12, %v1393_v14 }
 0x196   : > { %1737 = vmatpush.bf16.msra.mxu1 %v1657_v30  ;;  %v1601_v18 = vmax.f32 %v1227_v31, 0.0 }
 0x197   : > { %v1578_v46 = vmax.f32 %v1491_v26, 0.0 }
 0x199   : > { %v1130_v24 = vpop.f32.mrf.mxu1  ;;  %v1492_v14 = vpop.f32.mrf.mxu0 }
 0x19a   : > { %v1394_v42 = vpop.f32.mrf.mxu2  ;;  %v1131_v33 = vadd.f32 %v1130_v24, %v1033_v43  ;;  %1738 = vmatpush.bf16.msra.mxu1 %v3353_v61  ;;  %v3426_v12 = vpop.f32.mrf.mxu3  ;;  %v1036_v61 = vadd.f32 %v3254_v54, %v3883_v5  ;;  %v1302_v54 = vadd.f32 %v3202_v52, %v2998_v47  ;;  %v1305_v47 = vadd.f32 %v3223_v34, %v2953_v15  ;;  %v2186_v52 = vld [vmem:[%s3750_s3] sm:$0xf] }
 0x19b   : > { %v1395_v25 = vadd.f32 %v1394_v42, %v1297_v58  ;;  %v3885_v42 = vld [vmem:[#allocation53_spill] sm:$0xff] }
 0x19c   : > { %v1229_v30 = vadd.f32 %v3197_v38, %v1131_v33  ;;  %v1038_v31 = vadd.f32 %v3266_v17, %v3885_v42 }
 0x19d   : > { %v1493_v59 = vadd.f32 %v1492_v14, %v1395_v25 }
 0x19e   : > { %v1603_v55 = vmax.f32 %v1229_v30, 0.0  ;;  %1739 = vmatpush.bf16.msra.mxu1 %v3314_v1  ;;  %v3884_v1 = vld [vmem:[#allocation38_spill] sm:$0xff] }
 0x19f   : > { %v1580_v32 = vmax.f32 %v1493_v59, 0.0  ;;  %1436 = vmatmul.bf16.gmra.mxu2 %v3248_v28 }
 0x1a0   : > { %v3438_v23 = vpack.c.bf16 %v1603_v55, %v1601_v18 }
 0x1a1   : > { %v3440_v38 = vpack.c.bf16 %v1580_v32, %v1578_v46  ;;  %v1133_v58 = vpop.f32.mrf.mxu1  ;;  %v1495_v26 = vpop.f32.mrf.mxu0 }
 0x1a2   : > { %v1397_v43 = vpop.f32.mrf.mxu2  ;;  %v1134_v63 = vadd.f32 %v1133_v58, %v1036_v61  ;;  %1740 = vmatpush.bf16.msra.mxu1 %v3283_v2  ;;  %v3443_v24 = vpop.f32.mrf.mxu3 }
 0x1a3   : > { %v1398_v8 = vadd.f32 %v1397_v43, %v1300_v45 }
 0x1a4   : > { %1172 = vmatmul.bf16.gmra.mxu1 %v3436_v41  ;;  %2177 = vmatmul.msk.bf16.gmra.mxu0 %vm916_vm2, %v3884_v1  ;;  %v1232_v2 = vadd.f32 %v3219_v20, %v1134_v63  ;;  %v2254_v20 = vld [vmem:[%s3750_s3 + $0x8] sm:$0xf0] }
 0x1a5   : > { %v1496_v28 = vadd.f32 %v1495_v26, %v1398_v8  ;;  %v3470_v15 = vor.u32 %v2254_v20, %v2186_v52 }
 0x1a6   : > { %1741 = vmatpush.bf16.msra.mxu1 %v3250_v51  ;;  %v1605_v17 = vmax.f32 %v1232_v2, 0.0 }
 0x1a7   : > { %v1582_v45 = vmax.f32 %v1496_v28, 0.0 }
 0x1a9   : > { %v1135_v33 = vpop.f32.mrf.mxu1  ;;  %v1497_v7 = vpop.f32.mrf.mxu0 }
 0x1aa   : > { %v1399_v25 = vpop.f32.mrf.mxu2  ;;  %v1136_v14 = vadd.f32 %v1135_v33, %v1038_v31  ;;  %1742 = vmatpush.bf16.msra.mxu1 %v3217_v6  ;;  %v3455_v30 = vpop.f32.mrf.mxu3  ;;  %v3488_v31 = vld [vmem:[%s3750_s3 + $0x18] sm:$0x11] }
 0x1ab   : > { %v1400_v57 = vadd.f32 %v1399_v25, %v1302_v54 }
 0x1ac   : > { %v1234_v59 = vadd.f32 %v3230_v13, %v1136_v14  ;;  %v3886_v13 = vld [vmem:[#allocation34_spill] sm:$0xff] }
 0x1ad   : > { %v1498_v51 = vadd.f32 %v1497_v7, %v1400_v57  ;;  %v1041_v46 = vadd.f32 %v3287_v50, %v3886_v13  ;;  %v3888_v50 = vld [vmem:[#allocation39_spill] sm:$0xff] }
 0x1ae   : > { %v1607_v6 = vmax.f32 %v1234_v59, 0.0  ;;  %1743 = vmatpush.bf16.msra.mxu1 %v3185_v60  ;;  %v3887_v60 = vld [vmem:[#allocation46_spill] sm:$0xff]  ;;  %v1043_v28 = vadd.f32 %v3299_v48, %v3888_v50  ;;  %v1310_v48 = vadd.f32 %v3256_v29, %v2878_v36 }
 0x1af   : > { %v1584_v18 = vmax.f32 %v1498_v51, 0.0  ;;  %1441 = vmatmul.bf16.gmra.mxu2 %v3281_v53  ;;  %v1307_v53 = vadd.f32 %v3235_v10, %v3050_v44  ;;  %v1711_v10 = vunpack.c.l.b16 %v3488_v31 }
 0x1b0   : > { %v3472_v34 = vpack.c.bf16 %v1607_v6, %v1605_v17 }
 0x1b1   : > { %v3474_v55 = vpack.c.bf16 %v1584_v18, %v1582_v45  ;;  %v1138_v32 = vpop.f32.mrf.mxu1  ;;  %v1500_v63 = vpop.f32.mrf.mxu0  ;;  %v3500_v17 = vpack.c.b16 %v1711_v10, %v1711_v10 }
 0x1b2   : > { %v1402_v61 = vpop.f32.mrf.mxu2  ;;  %v1139_v58 = vadd.f32 %v1138_v32, %v1041_v46  ;;  %v3476_v8 = vpop.f32.mrf.mxu3 }
 0x1b3   : > { %v1403_v43 = vadd.f32 %v1402_v61, %v1305_v47  ;;  %3890 = vst [vmem:[#allocation14_spill] sm:$0xff] %v3500_v17 }
 0x1b4   : > { %1744 = vmatmul.bf16.vlgmr.msra.gmra.mxu1 %v3470_v15  ;;  %2178 = vmatmul.msk.bf16.gmra.mxu0 %vm916_vm2, %v3887_v60  ;;  %v1237_v33 = vadd.f32 %v3252_v49, %v1139_v58  ;;  %v3889_v49 = vld [vmem:[#allocation42_spill] sm:$0xff] }
 0x1b5   : > { %v1501_v26 = vadd.f32 %v1500_v63, %v1403_v43  ;;  %v1046_v20 = vadd.f32 %v3318_v0, %v3889_v49  ;;  %v3892_v0 = vld [vmem:[#allocation64_spill] sm:$0xff]  ;;  %v3893_v43 = vld [vmem:[#allocation30_spill] sm:$0xff] }
 0x1b6   : > { %v1609_v59 = vmax.f32 %v1237_v33, 0.0  ;;  %v1312_v58 = vadd.f32 %v3892_v0, %v2902_v4  ;;  %v1048_v63 = vadd.f32 %v3332_v40, %v3893_v43  ;;  %v3897_v40 = vld [vmem:[#allocation23_spill] sm:$0xff] }
 0x1b7   : > { %v1586_v51 = vmax.f32 %v1501_v26, 0.0 }
 0x1b9   : > { %v1140_v1 = vpop.f32.mrf.mxu1  ;;  %v1502_v14 = vpop.f32.mrf.mxu0 }
 0x1ba   : > { %v1404_v54 = vpop.f32.mrf.mxu2  ;;  %v1141_v25 = vadd.f32 %v1140_v1, %v1043_v28  ;;  %v3491_v57 = vpop.f32.mrf.mxu3 }
 0x1bb   : > { %v1405_v2 = vadd.f32 %v1404_v54, %v1307_v53  ;;  %v3894_v53 = vld [vmem:[#allocation65_spill] sm:$0xff] }
 0x1bc   : > { %v1239_v7 = vadd.f32 %v3263_v56, %v1141_v25 }
 0x1bd   : > { %v1503_v44 = vadd.f32 %v1502_v14, %v1405_v2  ;;  %v3895_v2 = vld [vmem:[#allocation67_spill] sm:$0xff] }
 0x1be   : > { %v1611_v47 = vmax.f32 %v1239_v7, 0.0 }
 0x1bf   : > { %v1588_v52 = vmax.f32 %v1503_v44, 0.0  ;;  %1446 = vmatmul.bf16.gmra.mxu2 %v3312_v3  ;;  %v3891_v3 = vld [vmem:[#allocation3_spill] sm:$0xff]  ;;  %v3896_v44 = vld [vmem:[#allocation66_spill] sm:$0xff] }
 0x1c0   : > { %v3502_v45 = vpack.c.bf16 %v1611_v47, %v1609_v59  ;;  %v1315_v10 = vadd.f32 %v3896_v44, %v3863_v22  ;;  %v3898_v47 = vld [vmem:[#allocation24_spill] sm:$0xff] }
 0x1c1   : > { %v3504_v56 = vpack.c.bf16 %v1588_v52, %v1586_v51  ;;  %v1143_v6 = vpop.f32.mrf.mxu1  ;;  %v1505_v36 = vpop.f32.mrf.mxu0  ;;  %v1051_v52 = vadd.f32 %v3898_v47, %v3897_v40 }
 0x1c2   : > { %v1407_v18 = vpop.f32.mrf.mxu2  ;;  %v1144_v46 = vadd.f32 %v1143_v6, %v1046_v20  ;;  %v3506_v29 = vpop.f32.mrf.mxu3 }
 0x1c3   : > { %v1408_v32 = vadd.f32 %v1407_v18, %v1310_v48 }
 0x1c4   : > { %1749 = vmatmul.bf16.gmra.mxu1 %v3500_v17  ;;  %2179 = vmatmul.msk.bf16.gmra.mxu0 %vm916_vm2, %v3891_v3  ;;  %v1242_v28 = vadd.f32 %v3894_v53, %v1144_v46 }
 0x1c5   : > { %v1506_v61 = vadd.f32 %v1505_v36, %v1408_v32 }
 0x1c6   : > { %v1613_v48 = vmax.f32 %v1242_v28, 0.0 }
 0x1c7   : > { %v1590_v4 = vmax.f32 %v1506_v61, 0.0  ;;  %v3899_v61 = vld [vmem:[#allocation4_spill] sm:$0xff] }
 0x1c9   : > { %v1145_v26 = vpop.f32.mrf.mxu1  ;;  %v1507_v33 = vpop.f32.mrf.mxu0 }
 0x1ca   : > { %v1409_v60 = vpop.f32.mrf.mxu2  ;;  %v1146_v1 = vadd.f32 %v1145_v26, %v1048_v63  ;;  %v3516_v25 = vpop.f32.mrf.mxu3  ;;  %v3902_v26 = vld [vmem:[#allocation19_spill] sm:$0xff] }
 0x1cb   : > { %v1410_v54 = vadd.f32 %v1409_v60, %v1312_v58  ;;  %v3900_v58 = vld [vmem:[#allocation35_spill] sm:$0xff]  ;;  %v3903_v60 = vld [vmem:[#allocation68_spill] sm:$0xff] }
 0x1cc   : > { %v1244_v14 = vadd.f32 %v3895_v2, %v1146_v1  ;;  %v1317_v53 = vadd.f32 %v3903_v60, %v3902_v26  ;;  %v3908_v60 = vld [vmem:[#allocation16_spill] sm:$0xff] }
 0x1cd   : > { %v1508_v7 = vadd.f32 %v1507_v33, %v1410_v54  ;;  %v3904_v54 = vld [vmem:[#allocation69_spill] sm:$0xff] }
 0x1ce   : > { %v1615_v59 = vmax.f32 %v1244_v14, 0.0 }
 0x1cf   : > { %v1592_v51 = vmax.f32 %v1508_v7, 0.0  ;;  %1451 = vmatmul.bf16.gmra.mxu2 %v3351_v27  ;;  %v3901_v27 = vld [vmem:[#allocation27_spill] sm:$0xff] }
 0x1d0   : > { %v3524_v20 = vpack.c.bf16 %v1615_v59, %v1613_v48  ;;  %v1053_v63 = vadd.f32 %v3901_v27, %v3900_v58  ;;  %v3906_v59 = vld [vmem:[#allocation70_spill] sm:$0xff] }
 0x1d1   : > { %v3526_v6 = vpack.c.bf16 %v1592_v51, %v1590_v4  ;;  %v1148_v18 = vpop.f32.mrf.mxu1  ;;  %v1510_v3 = vpop.f32.mrf.mxu0  ;;  %v1320_v51 = vadd.f32 %v3906_v59, %v3873_v11 }
 0x1d2   : > { %v1412_v46 = vpop.f32.mrf.mxu2  ;;  %v1149_v32 = vadd.f32 %v1148_v18, %v1051_v52  ;;  %v3528_v0 = vpop.f32.mrf.mxu3 }
 0x1d3   : > { %v1413_v36 = vadd.f32 %v1412_v46, %v1315_v10  ;;  %v3905_v10 = vld [vmem:[#allocation71_spill] sm:$0xff] }
 0x1d4   : > { %2180 = vmatmul.msk.bf16.gmra.mxu0 %vm916_vm2, %v3899_v61  ;;  %v1247_v33 = vadd.f32 %v3904_v54, %v1149_v32  ;;  %v3912_v54 = vld [vmem:[#allocation36_spill] sm:$0xff] }
 0x1d5   : > { %v1511_v22 = vadd.f32 %v1510_v3, %v1413_v36 }
 0x1d6   : > { %v1617_v47 = vmax.f32 %v1247_v33, 0.0 }
 0x1d7   : > { %v1594_v52 = vmax.f32 %v1511_v22, 0.0  ;;  %v3910_v22 = vld [vmem:[#allocation5_spill] sm:$0xff] }
 0x1d9   : > { %v1150_v28 = vpop.f32.mrf.mxu1  ;;  %v1512_v7 = vpop.f32.mrf.mxu0 }
 0x1da   : > { %v1414_v1 = vpop.f32.mrf.mxu2  ;;  %v1151_v2 = vadd.f32 %v1150_v28, %v1053_v63  ;;  %v3537_v44 = vpop.f32.mrf.mxu3 }
 0x1db   : > { %v1415_v14 = vadd.f32 %v1414_v1, %v1317_v53  ;;  %v3909_v53 = vld [vmem:[#allocation32_spill] sm:$0xff] }
 0x1dc   : > { %v1249_v48 = vadd.f32 %v3905_v10, %v1151_v2  ;;  %v1056_v28 = vadd.f32 %v3909_v53, %v3908_v60 }
 0x1dd   : > { %v1513_v4 = vadd.f32 %v1512_v7, %v1415_v14  ;;  %v3913_v7 = vld [vmem:[#allocation17_spill] sm:$0xff] }
 0x1de   : > { %v1619_v18 = vmax.f32 %v1249_v48, 0.0 }
 0x1df   : > { %v1596_v46 = vmax.f32 %v1513_v4, 0.0  ;;  %1456 = vmatmul.bf16.gmra.mxu2 %v3378_v37  ;;  %v3911_v37 = vld [vmem:[#allocation18_spill] sm:$0xff] }
 0x1e0   : > { %v3545_v32 = vpack.c.bf16 %v1619_v18, %v1617_v47  ;;  %v1058_v33 = vadd.f32 %v3912_v54, %v3911_v37  ;;  %v3919_v54 = vld [vmem:[#allocation40_spill] sm:$0xff] }
 0x1e1   : > { %v3543_v36 = vpack.c.bf16 %v1596_v46, %v1594_v52  ;;  %v1153_v3 = vpop.f32.mrf.mxu1  ;;  %v1515_v63 = vpop.f32.mrf.mxu0  ;;  %v3916_v52 = vld [vmem:[#allocation8_spill] sm:$0xff] }
 0x1e2   : > { %v1417_v61 = vpop.f32.mrf.mxu2  ;;  %v3547_v26 = vpop.f32.mrf.mxu3  ;;  %v1154_v1 = vadd.f32 %v1153_v3, %v1056_v28  ;;  %v1325_v18 = vadd.f32 %v3916_v52, %v3878_v16 }
 0x1e3   : > { %v1418_v27 = vadd.f32 %v1417_v61, %v1320_v51  ;;  %3907 = vst [vmem:[#allocation58_spill] sm:$0xff] %v3547_v26  ;;  %v3915_v51 = vld [vmem:[#allocation20_spill] sm:$0xff] }
 0x1e4   : > { %2181 = vmatmul.msk.bf16.gmra.mxu0 %vm916_vm2, %v3910_v22  ;;  %v1252_v10 = vadd.f32 %v3913_v7, %v1154_v1  ;;  %v3918_v1 = vld [vmem:[#allocation12_spill] sm:$0xff]  ;;  %v3920_v7 = vld [vmem:[#allocation6_spill] sm:$0xff] }
 0x1e5   : > { %v3551_v11 = vadd.f32 %v1515_v63, %v1418_v27 }
 0x1e6   : > { %v1621_v46 = vmax.f32 %v1252_v10, 0.0  ;;  %v3921_v10 = vld [vmem:[#allocation15_spill] sm:$0xff] }
 0x1e9   : > { %v1155_v2 = vpop.f32.mrf.mxu1  ;;  %v3560_v4 = vpop.f32.mrf.mxu0 }
 0x1ea   : > { %v3557_v14 = vpop.f32.mrf.mxu2  ;;  %v1156_v48 = vadd.f32 %v1155_v2, %v1058_v33  ;;  %v3562_v59 = vpop.f32.mrf.mxu3  ;;  %v1061_v33 = vadd.f32 %v3919_v54, %v3918_v1 }
 0x1eb   : > { %3914 = vst [vmem:[#allocation55_spill] sm:$0xff] %v3562_v59 }
 0x1ec   : > { %v1254_v47 = vadd.f32 %v3915_v51, %v1156_v48  ;;  %v3922_v48 = vld [vmem:[#allocation44_spill] sm:$0xff] }
 0x1ed   : > { %v1063_v51 = vadd.f32 %v3922_v48, %v3921_v10 }
 0x1ee   : > { %v1623_v3 = vmax.f32 %v1254_v47, 0.0 }
 0x1ef   : > { %1461 = vmatmul.bf16.gmra.mxu2 %v3411_v35  ;;  %v3923_v35 = vld [vmem:[#allocation52_spill] sm:$0xff] }
 0x1f0   : > { %v3568_v61 = vpack.c.bf16 %v1623_v3, %v1621_v46  ;;  %v1327_v47 = vadd.f32 %v3923_v35, %v3881_v21  ;;  %v1330_v21 = vadd.f32 %v3383_v62, %v3883_v5  ;;  %v1332_v5 = vadd.f32 %v3397_v39, %v3885_v42 }
 0x1f1   : > { %v1158_v27 = vpop.f32.mrf.mxu1  ;;  %v1520_v28 = vpop.f32.mrf.mxu0  ;;  %v1335_v39 = vadd.f32 %v3415_v9, %v3886_v13  ;;  %v1337_v9 = vadd.f32 %v3426_v12, %v3888_v50  ;;  %v3939_v12 = vld [vmem:[#allocation26_spill] sm:$0xff]  ;;  %v3940_v50 = vld [vmem:[#allocation72_spill] sm:$0xff] }
 0x1f2   : > { %v1422_v63 = vpop.f32.mrf.mxu2  ;;  %v3570_v22 = vpop.f32.mrf.mxu3  ;;  %v1159_v16 = vadd.f32 %v1158_v27, %v1061_v33 }
 0x1f3   : > { %v1423_v53 = vadd.f32 %v1422_v63, %v1325_v18  ;;  %3917 = vst [vmem:[#allocation60_spill] sm:$0xff] %v3570_v22  ;;  %v3924_v18 = vld [vmem:[#allocation25_spill] sm:$0xff] }
 0x1f4   : > { %2182 = vmatmul.msk.bf16.gmra.mxu0 %vm916_vm2, %v3920_v7  ;;  %v1257_v3 = vadd.f32 %v3924_v18, %v1159_v16  ;;  %v3928_v18 = vld [vmem:[#allocation11_spill] sm:$0xff] }
 0x1f5   : > { %v1521_v2 = vadd.f32 %v1520_v28, %v1423_v53  ;;  %v3925_v53 = vld [vmem:[#allocation28_spill] sm:$0xff] }
 0x1f6   : > { %v1625_v7 = vmax.f32 %v1257_v3, 0.0  ;;  %v3930_v3 = vld [vmem:[#allocation7_spill] sm:$0xff] }
 0x1f7   : > { %v1602_v27 = vmax.f32 %v1521_v2, 0.0 }
 0x1f9   : > { %v1160_v52 = vpop.f32.mrf.mxu1  ;;  %v1522_v59 = vpop.f32.mrf.mxu0 }
 0x1fa   : > { %v1424_v46 = vpop.f32.mrf.mxu2  ;;  %v1161_v63 = vadd.f32 %v1160_v52, %v1063_v51  ;;  %v3581_v26 = vpop.f32.mrf.mxu3 }
 0x1fb   : > { %v1425_v22 = vadd.f32 %v1424_v46, %v1327_v47 }
 0x1fc   : > { %v1259_v28 = vadd.f32 %v3925_v53, %v1161_v63  ;;  %v3931_v63 = vld [vmem:[#allocation13_spill] sm:$0xff]  ;;  %v3932_v53 = vld [vmem:[#allocation50_spill] sm:$0xff] }
 0x1fd   : > { %v1523_v54 = vadd.f32 %v1522_v59, %v1425_v22  ;;  %v3929_v59 = vld [vmem:[#allocation47_spill] sm:$0xff]  ;;  %v1068_v62 = vadd.f32 %v3932_v53, %v3931_v63 }
 0x1fe   : > { %v1627_v33 = vmax.f32 %v1259_v28, 0.0  ;;  %v1066_v22 = vadd.f32 %v3929_v59, %v3928_v18  ;;  %v3934_v59 = vld [vmem:[#allocation37_spill] sm:$0xff] }
 0x1ff   : > { %v1604_v17 = vmax.f32 %v1523_v54, 0.0  ;;  %1466 = vmatmul.bf16.gmra.mxu2 %v3436_v41  ;;  %v3933_v54 = vld [vmem:[#allocation33_spill] sm:$0xff] }
 0x200   : > { %v1673_v16 = vpack.c.bf16 %v1627_v33, %v1625_v7 }
 0x201   : > { %v3587_v48 = vpack.c.bf16 %v1604_v17, %v1602_v27  ;;  %v1163_v51 = vpop.f32.mrf.mxu1  ;;  %v1525_v52 = vpop.f32.mrf.mxu0 }
 0x202   : > { %v1427_v35 = vpop.f32.mrf.mxu2  ;;  %v3589_v46 = vpop.f32.mrf.mxu3  ;;  %v1164_v41 = vadd.f32 %v1163_v51, %v1066_v22 }
 0x203   : > { %3926 = vst [vmem:[#allocation10_spill] sm:$0xff] %v3587_v48  ;;  %v1428_v47 = vadd.f32 %v1427_v35, %v1330_v21 }
 0x204   : > { %3927 = vst [vmem:[#allocation59_spill] sm:$0xff] %v3589_v46  ;;  %2183 = vmatmul.msk.bf16.gmra.mxu0 %vm916_vm2, %v3930_v3  ;;  %v1262_v7 = vadd.f32 %v3933_v54, %v1164_v41  ;;  %v3601_v46 = vpop.permute.xlu0 %638 }
 0x205   : > { %v1526_v2 = vadd.f32 %v1525_v52, %v1428_v47 }
 0x206   : > { %v1629_v48 = vmax.f32 %v1262_v7, 0.0 }
 0x207   : > { %v1606_v3 = vmax.f32 %v1526_v2, 0.0  ;;  %v3609_v2 = vpop.permute.xlu1 %643 }
 0x209   : > { %v1165_v17 = vpop.f32.mrf.mxu1  ;;  %v1527_v21 = vpop.f32.mrf.mxu0 }
 0x20a   : > { %v1429_v28 = vpop.f32.mrf.mxu2  ;;  %v1166_v27 = vadd.f32 %v1165_v17, %v1068_v62  ;;  %v1371_v35 = vpop.f32.mrf.mxu3 }
 0x20b   : > { %v1430_v33 = vadd.f32 %v1429_v28, %v1332_v5  ;;  %v3935_v28 = vld [vmem:[#allocation51_spill] sm:$0xff]  ;;  %v3937_v35 = vld [vmem:[#allocation41_spill] sm:$0xff] }
 0x20c   : > { %v1264_v47 = vadd.f32 %v3934_v59, %v1166_v27  ;;  %v1071_v54 = vadd.f32 %v3935_v28, %v3601_v46  ;;  %v3941_v28 = vld [vmem:[#allocation57_spill] sm:$0xff] }
 0x20d   : > { %v1528_v52 = vadd.f32 %v1527_v21, %v1430_v33  ;;  %v3936_v33 = vld [vmem:[#allocation54_spill] sm:$0xff] }
 0x20e   : > { %v1631_v51 = vmax.f32 %v1264_v47, 0.0  ;;  %v1073_v21 = vadd.f32 %v3936_v33, %v3609_v2 }
 0x20f   : > { %v1608_v22 = vmax.f32 %v1528_v52, 0.0 }
 0x210   : > { %v1675_v42 = vpack.c.bf16 %v1631_v51, %v1629_v48  ;;  %v3938_v51 = vld [vmem:[#allocation45_spill] sm:$0xff] }
 0x211   : > { %v3605_v53 = vpack.c.bf16 %v1608_v22, %v1606_v3  ;;  %v1168_v41 = vpop.f32.mrf.mxu1  ;;  %v1530_v17 = vpop.f32.mrf.mxu0 }
 0x212   : > { %v1432_v62 = vpop.f32.mrf.mxu2  ;;  %1754 = vmatpush.bf16.msra.mxu3 %v1675_v42  ;;  %v1169_v27 = vadd.f32 %v1168_v41, %v1071_v54  ;;  %v3618_v42 = vpop.permute.xlu2 %648 }
 0x213   : > { %v1433_v5 = vadd.f32 %v1432_v62, %v1335_v39  ;;  %v1076_v54 = vadd.f32 %v3941_v28, %v3618_v42 }
 0x214   : > { %v1267_v59 = vadd.f32 %v3937_v35, %v1169_v27  ;;  %v3942_v35 = vld [vmem:[#allocation48_spill] sm:$0xff] }
 0x215   : > { %v1531_v7 = vadd.f32 %v1530_v17, %v1433_v5  ;;  %v1322_v17 = vadd.f32 %v3940_v50, %v3939_v12 }
 0x216   : > { %1755 = vmatpush.bf16.msra.mxu3 %v1673_v16  ;;  %v1633_v16 = vmax.f32 %v1267_v59, 0.0 }
 0x217   : > { %v1610_v41 = vmax.f32 %v1531_v7, 0.0 }
 0x219   : > { %v1170_v13 = vpop.f32.mrf.mxu1  ;;  %v1532_v3 = vpop.f32.mrf.mxu0 }
 0x21a   : > { %v1434_v48 = vpop.f32.mrf.mxu2  ;;  %v1171_v47 = vadd.f32 %v1170_v13, %v1073_v21  ;;  %1756 = vmatpush.bf16.msra.mxu3 %v3568_v61  ;;  %v1340_v61 = vadd.f32 %v3443_v24, %v3889_v49  ;;  %v1420_v21 = vadd.f32 %v3557_v14, %v1322_v17  ;;  %v1342_v24 = vadd.f32 %v3455_v30, %v3893_v43 }
 0x21b   : > { %v1435_v52 = vadd.f32 %v1434_v48, %v1337_v9  ;;  %v1598_v30 = vmax.f32 %v3551_v11, 0.0  ;;  %v1345_v11 = vadd.f32 %v3476_v8, %v3897_v40  ;;  %v1347_v8 = vadd.f32 %v3491_v57, %v3900_v58  ;;  %v1644_v40 = vld [vmem:[%s3750_s3 + $0x20] sm:$0x1] }
 0x21c   : > { %v1269_v22 = vadd.f32 %v3938_v51, %v1171_v47 }
 0x21d   : > { %v1533_v39 = vadd.f32 %v1532_v3, %v1435_v52  ;;  %v1518_v52 = vadd.f32 %v3560_v4, %v1420_v21  ;;  %v2253_v4 = vld [vmem:[%s3750_s3 + $0x4] sm:$0xf] }
 0x21e   : > { %v1635_v62 = vmax.f32 %v1269_v22, 0.0  ;;  %1757 = vmatpush.bf16.msra.mxu3 %v3545_v32 }
 0x21f   : > { %v1612_v5 = vmax.f32 %v1533_v39, 0.0  ;;  %v1600_v14 = vmax.f32 %v1518_v52, 0.0  ;;  %v3943_v39 = vld [vmem:[#allocation2_spill] sm:$0xff] }
 0x220   : > { %v1677_v33 = vpack.c.bf16 %v1635_v62, %v1633_v16  ;;  %v2194_v62 = vld [vmem:[%s3750_s3 + $0x8] sm:$0xf] }
 0x221   : > { %v3627_v27 = vpack.c.bf16 %v1612_v5, %v1610_v41  ;;  %v1173_v9 = vpop.f32.mrf.mxu1  ;;  %v1535_v32 = vpop.f32.mrf.mxu0  ;;  %v1660_v5 = vpack.c.bf16 %v1600_v14, %v1598_v30 }
 0x222   : > { %v1437_v7 = vpop.f32.mrf.mxu2  ;;  %v1174_v13 = vadd.f32 %v1173_v9, %v1076_v54  ;;  %1758 = vmatpush.bf16.msra.mxu3 %v3524_v20 }
 0x223   : > { %v1438_v48 = vadd.f32 %v1437_v7, %v1340_v61 }
 0x224   : > { %v1272_v59 = vadd.f32 %v3942_v35, %v1174_v13  ;;  %v1713_v35 = vunpack.c.l.b16 %v1644_v40 }
 0x225   : > { %v1536_v47 = vadd.f32 %v1535_v32, %v1438_v48  ;;  %v1712_v48 = vunpack.c.h.b16 %v3488_v31 }
 0x226   : > { %v1637_v3 = vmax.f32 %v1272_v59, 0.0  ;;  %1759 = vmatpush.bf16.msra.mxu3 %v3502_v45  ;;  %v2188_v45 = vld [vmem:[%s3750_s3 + $0xc] sm:$0xf0]  ;;  %v3679_v57 = vpack.c.b16 %v1713_v35, %v1713_v35 }
 0x227   : > { %v3651_v12 = vor.u32 %v2253_v4, %v2188_v45  ;;  %v1614_v50 = vmax.f32 %v1536_v47, 0.0  ;;  %v3676_v47 = vpack.c.b16 %v1712_v48, %v1712_v48 }
 0x228   : > { %v1679_v49 = vpack.c.bf16 %v1637_v3, %v1637_v3 }
 0x229   : > { %v1175_v51 = vpop.f32.mrf.mxu1  ;;  %v1537_v20 = vpop.f32.mrf.mxu0 }
 0x22a   : > { %v1439_v22 = vpop.f32.mrf.mxu2  ;;  %v1731_v16 = vand.u32 %v1679_v49, %v3943_v39  ;;  %1760 = vmatpush.bf16.msra.mxu3 %v3472_v34  ;;  %v2255_v34 = vld [vmem:[%s3750_s3 + $0x10] sm:$0xf0] }
 0x22b   : > { %v1440_v41 = vadd.f32 %v1439_v22, %v1342_v24  ;;  %v3654_v28 = vor.u32 %v2255_v34, %v2194_v62 }
 0x22c   : > { %1778 = vmatpush.bf16.msrb.mxu1 %v1731_v16 }
 0x22d   : > { %v1538_v43 = vadd.f32 %v1537_v20, %v1440_v41  ;;  %v3944_v20 = vld [vmem:[#allocation31_spill] sm:$0xff] }
 0x22e   : > { %1761 = vmatpush.bf16.msra.mxu3 %v3438_v23 }
 0x22f   : > { %v1616_v17 = vmax.f32 %v1538_v43, 0.0 }
 0x230   : > { %1779 = vmatpush.bf16.msrb.mxu1 %v1677_v33 }
 0x231   : > { %v3658_v54 = vpack.c.bf16 %v1616_v17, %v1614_v50  ;;  %v3660_v21 = vpop.f32.mrf.mxu1  ;;  %1762 = vmatmul.bf16.vlgmr.msra.gmra.mxu3 %v3651_v12  ;;  %v1540_v7 = vpop.f32.mrf.mxu0 }
 0x232   : > { %1790 = vmatpush.bf16.msrb.mxu3 %v1660_v5  ;;  %v1442_v61 = vpop.f32.mrf.mxu2 }
 0x233   : > { %v1443_v9 = vadd.f32 %v1442_v61, %v1345_v11  ;;  %2196 = vmatmul.msk.bf16.vlgmr.msrb.gmra.mxu1 %vm916_vm2, %v3654_v28 }
 0x235   : > { %v1541_v23 = vadd.f32 %v1540_v7, %v1443_v9  ;;  %v3945_v7 = vld [vmem:[#allocation14_spill] sm:$0xff] }
 0x236   : > { %1791 = vmatpush.bf16.msrb.mxu3 %v3543_v36 }
 0x239   : > { %v3672_v13 = vpop.f32.mrf.mxu1  ;;  %v1542_v36 = vpop.f32.mrf.mxu0 }
 0x23a   : > { %1792 = vmatpush.bf16.msrb.mxu3 %v3526_v6  ;;  %v1444_v33 = vpop.f32.mrf.mxu2  ;;  %v1618_v6 = vmax.f32 %v1541_v23, 0.0  ;;  %v3946_v23 = vld [vmem:[#allocation58_spill] sm:$0xff] }
 0x23b   : > { %v1445_v32 = vadd.f32 %v1444_v33, %v1347_v8  ;;  %v1360_v8 = vadd.f32 %v3946_v23, %v3928_v18  ;;  %v1367_v18 = vadd.f32 %v3581_v26, %v3609_v2 }
 0x23d   : > { %v1543_v59 = vadd.f32 %v1542_v36, %v1445_v32 }
 0x23e   : > { %1793 = vmatpush.bf16.msrb.mxu3 %v3504_v56  ;;  %v1350_v56 = vadd.f32 %v3506_v29, %v3908_v60 }
 0x23f   : > { %v1620_v52 = vmax.f32 %v1543_v59, 0.0 }
 0x241   : > { %v3681_v58 = vpack.c.bf16 %v1620_v52, %v1618_v6  ;;  %v3683_v24 = vpop.f32.mrf.mxu1  ;;  %1767 = vmatmul.bf16.gmra.mxu3 %v3676_v47  ;;  %v1545_v31 = vpop.f32.mrf.mxu0 }
 0x242   : > { %1794 = vmatpush.bf16.msrb.mxu3 %v3474_v55  ;;  %v1447_v3 = vpop.f32.mrf.mxu2  ;;  %v1352_v55 = vadd.f32 %v3516_v25, %v3911_v37  ;;  %v1357_v25 = vadd.f32 %v3537_v44, %v3921_v10 }
 0x243   : > { %2197 = vmatmul.msk.bf16.gmra.mxu1 %vm916_vm2, %v3679_v57  ;;  %v1448_v49 = vadd.f32 %v1447_v3, %v1350_v56  ;;  %v3948_v3 = vld [vmem:[#allocation60_spill] sm:$0xff] }
 0x245   : > { %v1546_v22 = vadd.f32 %v1545_v31, %v1448_v49  ;;  %v1365_v31 = vadd.f32 %v3948_v3, %v3601_v46 }
 0x246   : > { %1795 = vmatpush.bf16.msrb.mxu3 %v3440_v38 }
 0x247   : > { %v1622_v4 = vmax.f32 %v1546_v22, 0.0 }
 0x249   : > { %v1752_v51 = vpop.f32.mrf.mxu1  ;;  %v1547_v41 = vpop.f32.mrf.mxu0 }
 0x24a   : > { %1796 = vmatpush.bf16.msrb.mxu3 %v3413_v19  ;;  %v1449_v14 = vpop.f32.mrf.mxu2  ;;  %v1355_v19 = vadd.f32 %v3528_v0, %v3918_v1  ;;  %v3947_v1 = vld [vmem:[#allocation55_spill] sm:$0xff] }
 0x24b   : > { %v1450_v16 = vadd.f32 %v1449_v14, %v1352_v55  ;;  %v1362_v40 = vadd.f32 %v3947_v1, %v3931_v63 }
 0x24d   : > { %v1548_v38 = vadd.f32 %v1547_v41, %v1450_v16  ;;  %v3949_v41 = vld [vmem:[#allocation59_spill] sm:$0xff] }
 0x24e   : > { %1797 = vmatpush.bf16.msrb.mxu3 %v3944_v20  ;;  %v1370_v20 = vadd.f32 %v3949_v41, %v3618_v42  ;;  %v3950_v42 = vld [vmem:[#allocation10_spill] sm:$0xff] }
 0x24f   : > { %v1624_v45 = vmax.f32 %v1548_v38, 0.0 }
 0x251   : > { %v1672_v30 = vpack.c.bf16 %v1624_v45, %v1622_v4  ;;  %1798 = vmatmul.bf16.vlgmr.msrb.gmra.mxu3 %v3470_v15  ;;  %v1550_v29 = vpop.f32.mrf.mxu0 }
 0x252   : > { %v1452_v43 = vpop.f32.mrf.mxu2 }
 0x253   : > { %v1453_v60 = vadd.f32 %v1452_v43, %v1355_v19 }
 0x255   : > { %v1551_v62 = vadd.f32 %v1550_v29, %v1453_v60 }
 0x257   : > { %v1626_v17 = vmax.f32 %v1551_v62, 0.0  ;;  %v1697_v62 = vpop.permute.xlu1 %1696 }
 0x259   : > { %v1552_v5 = vpop.f32.mrf.mxu0 }
 0x25a   : > { %v1454_v37 = vpop.f32.mrf.mxu2 }
 0x25b   : > { %v1455_v34 = vadd.f32 %v1454_v37, %v1357_v25 }
 0x25d   : > { %v1553_v50 = vadd.f32 %v1552_v5, %v1455_v34  ;;  %v1751_v34 = vadd.f32 %v3683_v24, %v1697_v62 }
 0x25f   : > { %v1628_v11 = vmax.f32 %v1553_v50, 0.0 }
 0x261   : > { %v1674_v61 = vpack.c.bf16 %v1628_v11, %v1626_v17  ;;  %1803 = vmatmul.bf16.gmra.mxu3 %v3945_v7  ;;  %v1555_v15 = vpop.f32.mrf.mxu0 }
 0x262   : > { %v1457_v9 = vpop.f32.mrf.mxu2 }
 0x263   : > { %v1458_v0 = vadd.f32 %v1457_v9, %v1360_v8 }
 0x265   : > { %v1556_v10 = vadd.f32 %v1555_v15, %v1458_v0 }
 0x267   : > { %v1630_v36 = vmax.f32 %v1556_v10, 0.0 }
 0x269   : > { %v1557_v48 = vpop.f32.mrf.mxu0 }
 0x26a   : > { %v1459_v44 = vpop.f32.mrf.mxu2 }
 0x26b   : > { %v1460_v33 = vadd.f32 %v1459_v44, %v1362_v40 }
 0x26d   : > { %v1558_v32 = vadd.f32 %v1557_v48, %v1460_v33 }
 0x26f   : > { %v1632_v35 = vmax.f32 %v1558_v32, 0.0 }
 0x271   : > { %v1676_v59 = vpack.c.bf16 %v1632_v35, %v1630_v36  ;;  %v1560_v52 = vpop.f32.mrf.mxu0 }
 0x272   : > { %v1462_v6 = vpop.f32.mrf.mxu2 }
 0x273   : > { %1808 = vmatpush.bf16.msra.mxu1 %v1676_v59  ;;  %v1463_v56 = vadd.f32 %v1462_v6, %v1365_v31 }
 0x275   : > { %v1561_v49 = vadd.f32 %v1560_v52, %v1463_v56 }
 0x277   : > { %1809 = vmatpush.bf16.msra.mxu1 %v1674_v61  ;;  %v1634_v22 = vmax.f32 %v1561_v49, 0.0 }
 0x279   : > { %v1562_v14 = vpop.f32.mrf.mxu0 }
 0x27a   : > { %v1464_v63 = vpop.f32.mrf.mxu2 }
 0x27b   : > { %v1465_v55 = vadd.f32 %v1464_v63, %v1367_v18  ;;  %1810 = vmatpush.bf16.msra.mxu1 %v1672_v30 }
 0x27d   : > { %v1563_v51 = vadd.f32 %v1562_v14, %v1465_v55 }
 0x27f   : > { %v1636_v16 = vmax.f32 %v1563_v51, 0.0  ;;  %1811 = vmatpush.bf16.msra.mxu1 %v3681_v58 }
 0x281   : > { %v1678_v38 = vpack.c.bf16 %v1636_v16, %v1634_v22  ;;  %v1565_v45 = vpop.f32.mrf.mxu0 }
 0x282   : > { %v1467_v46 = vpop.f32.mrf.mxu2 }
 0x283   : > { %v1468_v4 = vadd.f32 %v1467_v46, %v1370_v20  ;;  %1812 = vmatpush.bf16.msra.mxu1 %v3658_v54  ;;  %v1687_v54 = vpop.permute.xlu2 %1686 }
 0x285   : > { %v1566_v26 = vadd.f32 %v1565_v45, %v1468_v4 }
 0x287   : > { %v1638_v2 = vmax.f32 %v1566_v26, 0.0  ;;  %1813 = vmatpush.bf16.msra.mxu1 %v3627_v27 }
 0x289   : > { %v1680_v30 = vpack.c.bf16 %v1638_v2, %v1638_v2  ;;  %v1567_v58 = vpop.f32.mrf.mxu0 }
 0x28a   : > { %v1469_v43 = vpop.f32.mrf.mxu2 }
 0x28b   : > { %v1734_v29 = vand.u32 %v1680_v30, %v3943_v39  ;;  %1814 = vmatpush.bf16.msra.mxu1 %v3605_v53  ;;  %v1746_v53 = vadd.f32 %v3660_v21, %v1687_v54 }
 0x28d   : > { %1832 = vmatpush.bf16.msra.mxu3 %v1734_v29 }
 0x28f   : > { %1815 = vmatpush.bf16.msra.mxu1 %v3950_v42 }
 0x291   : > { %1833 = vmatpush.bf16.msra.mxu3 %v1678_v38 }
 0x292   : > { %1816 = vmatmul.bf16.vlgmr.msra.gmra.mxu1 %v3651_v12 }
 0x294   : > { %2198 = vmatmul.msk.bf16.vlgmr.msra.gmra.mxu3 %vm916_vm2, %v3654_v28 }
 0x2a2   : > { %1821 = vmatmul.bf16.gmra.mxu1 %v3676_v47  ;;  %v1692_v47 = vpop.permute.xlu0 %1691 }
 0x2a4   : > { %2199 = vmatmul.msk.bf16.gmra.mxu3 %vm916_vm2, %v3679_v57  ;;  %v1748_v57 = vadd.f32 %v3672_v13, %v1692_v47 }
 0x2b0   : > { %v1781_v27 = vpop.f32.mrf.mxu1 }
 0x2b4   : > { %v1763_v39 = vpop.f32.mrf.mxu3 }
 0x2b5   : > { %v1764_v19 = vadd.f32 %v1763_v39, %v1746_v53 }
 0x2b7   : > { %v1782_v12 = vadd.f32 %v1781_v27, %v1764_v19 }
 0x2b8   : > { %v1783_v28 = vpop.f32.mrf.mxu1 }
 0x2b9   : > { %1844 = vst [vmem:[%s3728_s24] sm:$0xff] %v1782_v12 }
 0x2bc   : > { %v1765_v60 = vpop.f32.mrf.mxu3 }
 0x2bd   : > { %v1766_v25 = vadd.f32 %v1765_v60, %v1748_v57 }
 0x2bf   : > { %v1784_v37 = vadd.f32 %v1783_v28, %v1766_v25 }
 0x2c0   : > { %v1786_v21 = vpop.f32.mrf.mxu1 }
 0x2c1   : > { %1846 = vst [vmem:[%s3728_s24 + $0x10] sm:$0xff] %v1784_v37 }
 0x2c4   : > { %v1768_v5 = vpop.f32.mrf.mxu3 }
 0x2c5   : > { %v1769_v50 = vadd.f32 %v1768_v5, %v1751_v34 }
 0x2c7   : > { %v1787_v17 = vadd.f32 %v1786_v21, %v1769_v50 }
 0x2c8   : > { %v1788_v11 = vpop.f32.mrf.mxu1 }
 0x2c9   : > { %1848 = vst [vmem:[%s3728_s24 + $0x20] sm:$0x1] %v1787_v17 }
 0x2cc   : > { %v1770_v61 = vpop.f32.mrf.mxu3 }
 0x2d4   : > { %v1799_v9 = vpop.f32.mrf.mxu3 }
 0x2d5   : > { %v1800_v8 = vadd.f32 %v1799_v9, %v1687_v54 }
 0x2dc   : > { %v1801_v7 = vpop.f32.mrf.mxu3 }
 0x2dd   : > { %v1802_v24 = vadd.f32 %v1801_v7, %v1692_v47 }
 0x2e4   : > { %v1804_v15 = vpop.f32.mrf.mxu3 }
 0x2e5   : > { %v1805_v36 = vadd.f32 %v1804_v15, %v1697_v62 }
 0x2ec   : > { %v1806_v13 = vpop.f32.mrf.mxu3 }
 0x30f   : > { %v1817_v23 = vpop.f32.mrf.mxu1 }
 0x310   : > { %v1818_v0 = vadd.f32 %v1817_v23, %v1800_v8 }
 0x317   : > { %v1819_v1 = vpop.f32.mrf.mxu1  ;;  %v1835_v40 = vpop.f32.mrf.mxu3 }
 0x318   : > { %v1836_v44 = vadd.f32 %v1835_v40, %v1818_v0  ;;  %v1820_v10 = vadd.f32 %v1819_v1, %v1802_v24 }
 0x31a   : > { %1845 = vst [vmem:[%s3728_s24 + $0x8] sm:$0xff] %v1836_v44 }
 0x31f   : > { %v1822_v33 = vpop.f32.mrf.mxu1  ;;  %v1837_v48 = vpop.f32.mrf.mxu3 }
 0x320   : > { %v1838_v32 = vadd.f32 %v1837_v48, %v1820_v10  ;;  %v1823_v35 = vadd.f32 %v1822_v33, %v1805_v36 }
 0x322   : > { %1847 = vst [vmem:[%s3728_s24 + $0x18] sm:$0xff] %v1838_v32 }
 0x327   : > { %v1840_v59 = vpop.f32.mrf.mxu3  ;;  %v1824_v6 = vpop.f32.mrf.mxu1 }
 0x328   : > { %v1841_v52 = vadd.f32 %v1840_v59, %v1823_v35 }
 0x32a   : > { %1849 = vst [vmem:[%s3728_s24 + $0x28] sm:$0x1] %v1841_v52 }
 0x32f   : > { %v1842_v3 = vpop.f32.mrf.mxu3 }
 0x330 PF: > { %s15_s20 = sadd.s32 1, %s2319_s20   ;;  %s3951_s18 = smov %s2315_s19 }
 0x331   : > { %p12_p5 = scmp.ge.s32.totalorder %s15_s20, 4   ;;  %s3952_s19 = smov %s3954_s21 }
 0x333   :  { %14 = sbr.rel (!%p12_p5) target bundleno = 2 (0x2), region = 70 }

</bundles_post_ra>
